<compile_context>
chip_gen: v6e
topology: v6e:2x2x1
jax: 0.10.0
libtpu: 0.0.40
codegen_flags: <defaults>
</compile_context>

<pallas_src>
import math
import numpy as np
import jax
import jax.numpy as jnp
from jax.experimental import pallas as pl
from jax.experimental.pallas import tpu as pltpu

# ------------------------- model hyper-parameters ---------------------------
N_NODES   = 8     # N   (number of table cells / graph nodes)
INPUT_DIM = 32    # D   (input_dim)
GNN_HID   = 16    # gnn_hidden
GNN_OUT   = 16    # gnn_out
N_HEADS   = 4     # transformer_heads
N_LAYERS  = 2     # transformer_layers
FFN_DIM   = 4 * INPUT_DIM
N_AGG     = 4     # num_agg_classes
FUSE_HID  = 256
HEAD_DIM  = INPUT_DIM // N_HEADS
LN_EPS    = 1e-5
W_LANES   = 128   # lane width of the main parameter slab


# --------------------- static parameter-slab layout --------------------------
def _align8(n):
    return (n + 7) & ~7


def _build_w_layout():
    """Row offsets inside slab_w [W_ROWS, 128]; every block is 8-row aligned."""
    off, rows = {}, 0

    def add(name, nrows):
        nonlocal rows
        off[name] = rows
        rows += _align8(nrows)

    add("g_w1", INPUT_DIM); add("g_b1", 1)          # [32,16] / [1,16]
    add("g_w2", GNN_HID);   add("g_b2", 1)          # [16,16] / [1,16]
    for l in range(N_LAYERS):
        for h in range(N_HEADS):                    # per-head projections [32,8]
            add(f"wq{l}_{h}", INPUT_DIM)
            add(f"wk{l}_{h}", INPUT_DIM)
            add(f"wv{l}_{h}", INPUT_DIM)
        add(f"bq{l}", N_HEADS)                      # [4,8]  (per-head bias rows)
        add(f"bk{l}", N_HEADS)
        add(f"bv{l}", N_HEADS)
        add(f"wo{l}", INPUT_DIM); add(f"bo{l}", 1)  # [32,32] / [1,32]
        add(f"ln1g{l}", 1); add(f"ln1b{l}", 1)      # [1,32]
        add(f"fw1{l}", INPUT_DIM); add(f"fb1{l}", 1)   # [32,128] / [1,128]
        add(f"fw2{l}", FFN_DIM);   add(f"fb2{l}", 1)   # [128,32] / [1,32]
        add(f"ln2g{l}", 1); add(f"ln2b{l}", 1)
    # output heads, zero-padded to 128 lanes (main->lane0, row->lane1, agg->2:6)
    add("w_row", GNN_OUT)       # [16,128]
    add("w_agg", GNN_OUT)       # [16,128]
    add("w_out", FUSE_HID)      # [256,128]
    add("b_head", 1)            # [1,128]
    return off, rows


OFF_W, W_ROWS = _build_w_layout()

OFF_F = {
    "fus_wg": 0,
    "fus_wt": _align8(GNN_OUT),
    "fus_b":  _align8(GNN_OUT) + _align8(INPUT_DIM),
}
F_ROWS = OFF_F["fus_b"] + 8


# ------------------------------- the kernel ---------------------------------
def structrelnet_kernel(x_ref, adj_ref, w_ref, f_ref, out_ref):
    f32 = jnp.float32

    def blk(name, nrows, ncols, row_off=0):
        r0 = OFF_W[name] + row_off
        return w_ref[r0:r0 + nrows, 0:ncols]

    x   = x_ref[...]        # [N, D]  f32
    adj = adj_ref[...]      # [N, N]  normalized adjacency

    # ------------------------------ GNN (GCN x2) -----------------------------
    h = jnp.dot(x, blk("g_w1", INPUT_DIM, GNN_HID), preferred_element_type=f32)
    h = jnp.dot(adj, h, preferred_element_type=f32) + blk("g_b1", 1, GNN_HID)
    h = jnp.maximum(h, 0.0)                                          # [N, GNN_HID]
    g = jnp.dot(h, blk("g_w2", GNN_HID, GNN_OUT), preferred_element_type=f32)
    g = jnp.dot(adj, g, preferred_element_type=f32) + blk("g_b2", 1, GNN_OUT) + h

    # --------------------------- transformer stack ---------------------------
    def layer_norm(v, gamma, beta):
        mu = jnp.mean(v, axis=-1, keepdims=True)
        c = v - mu
        var = jnp.mean(c * c, axis=-1, keepdims=True)
        return c * jax.lax.rsqrt(var + LN_EPS) * gamma + beta

    scale = 1.0 / math.sqrt(HEAD_DIM)
    t = x                                                            # [N, D]
    for l in range(N_LAYERS):                                        # static unroll
        attn = jnp.zeros((N_NODES, INPUT_DIM), f32)
        for hh in range(N_HEADS):                                    # static unroll
            wq = blk(f"wq{l}_{hh}", INPUT_DIM, HEAD_DIM)
            wk = blk(f"wk{l}_{hh}", INPUT_DIM, HEAD_DIM)
            wv = blk(f"wv{l}_{hh}", INPUT_DIM, HEAD_DIM)
            bq = blk(f"bq{l}", 1, HEAD_DIM, row_off=hh)
            bk = blk(f"bk{l}", 1, HEAD_DIM, row_off=hh)
            bv = blk(f"bv{l}", 1, HEAD_DIM, row_off=hh)
            qh = jnp.dot(t, wq, preferred_element_type=f32) + bq     # [N, HD]
            kh = jnp.dot(t, wk, preferred_element_type=f32) + bk
            vh = jnp.dot(t, wv, preferred_element_type=f32) + bv
            s = jax.lax.dot_general(qh, kh, (((1,), (1,)), ((), ())),
                                    preferred_element_type=f32) * scale   # [N, N]
            s = s - jnp.max(s, axis=-1, keepdims=True)
            p = jnp.exp(s)
            p = p * pl.reciprocal(jnp.sum(p, axis=-1, keepdims=True), approx=True)
            oh = jnp.dot(p, vh, preferred_element_type=f32)          # [N, HD]
            # fold through the matching rows of W_O (== concat(heads) @ W_O)
            wo_h = blk(f"wo{l}", HEAD_DIM, INPUT_DIM, row_off=hh * HEAD_DIM)
            attn = attn + jnp.dot(oh, wo_h, preferred_element_type=f32)
        attn = attn + blk(f"bo{l}", 1, INPUT_DIM)

        t = layer_norm(t + attn, blk(f"ln1g{l}", 1, INPUT_DIM),
                       blk(f"ln1b{l}", 1, INPUT_DIM))

        ff = jnp.dot(t, blk(f"fw1{l}", INPUT_DIM, FFN_DIM),
                     preferred_element_type=f32) + blk(f"fb1{l}", 1, FFN_DIM)
        ff = jnp.maximum(ff, 0.0)
        ff = jnp.dot(ff, blk(f"fw2{l}", FFN_DIM, INPUT_DIM),
                     preferred_element_type=f32) + blk(f"fb2{l}", 1, INPUT_DIM)

        t = layer_norm(t + ff, blk(f"ln2g{l}", 1, INPUT_DIM),
                       blk(f"ln2b{l}", 1, INPUT_DIM))

    # ------------------------------ fusion ------------------------------------
    # concat([g, t]) @ fus_w  ==  g @ fus_w[:GNN_OUT] + t @ fus_w[GNN_OUT:]
    wg = f_ref[OFF_F["fus_wg"]:OFF_F["fus_wg"] + GNN_OUT, :]
    wt = f_ref[OFF_F["fus_wt"]:OFF_F["fus_wt"] + INPUT_DIM, :]
    fb = f_ref[OFF_F["fus_b"]:OFF_F["fus_b"] + 1, :]
    fused = (jnp.dot(g, wg, preferred_element_type=f32)
             + jnp.dot(t, wt, preferred_element_type=f32) + fb)
    fused = jnp.maximum(fused, 0.0)                                  # [N, 256]

    # --------------------- heads: one lane-dense [N, 128] store ---------------
    graph = jnp.mean(g, axis=0, keepdims=True)                       # [1, GNN_OUT]
    out = (jnp.dot(fused, blk("w_out", FUSE_HID, W_LANES), preferred_element_type=f32)
           + jnp.dot(g, blk("w_row", GNN_OUT, W_LANES), preferred_element_type=f32)
           + jnp.dot(graph, blk("w_agg", GNN_OUT, W_LANES), preferred_element_type=f32)
           + blk("b_head", 1, W_LANES))
    out_ref[...] = out                                               # [N, 128]


# ------------------------------ JAX-side glue --------------------------------
def build_norm_adj(edge_index, n):
    """Dense symmetric-normalized GCN adjacency: D^-1/2 (A + I) D^-1/2."""
    src, dst = edge_index[0], edge_index[1]
    a = jnp.zeros((n, n), jnp.float32)
    a = a.at[dst, src].set(1.0)
    a = jnp.maximum(a, jnp.eye(n, dtype=jnp.float32))
    deg = jnp.sum(a, axis=1)
    dinv = jax.lax.rsqrt(deg)
    return a * dinv[:, None] * dinv[None, :]


def init_params(key):
    """Deterministic synthetic parameters (shape-faithful, ~1/sqrt(fan_in))."""
    def dense(k, shape, fan_in):
        return jax.random.normal(k, shape, jnp.float32) * (1.0 / math.sqrt(fan_in))

    ks = iter(jax.random.split(key, 32))
    L, D, F = N_LAYERS, INPUT_DIM, FFN_DIM
    nrm = lambda k, s: 0.1 * jax.random.normal(k, s, jnp.float32)
    p = {}
    p["g_w1"] = dense(next(ks), (D, GNN_HID), D);        p["g_b1"] = nrm(next(ks), (1, GNN_HID))
    p["g_w2"] = dense(next(ks), (GNN_HID, GNN_OUT), GNN_HID); p["g_b2"] = nrm(next(ks), (1, GNN_OUT))
    p["t_wq"] = dense(next(ks), (L, D, D), D); p["t_wk"] = dense(next(ks), (L, D, D), D)
    p["t_wv"] = dense(next(ks), (L, D, D), D); p["t_wo"] = dense(next(ks), (L, D, D), D)
    p["t_bq"] = nrm(next(ks), (L, 1, D)); p["t_bk"] = nrm(next(ks), (L, 1, D))
    p["t_bv"] = nrm(next(ks), (L, 1, D)); p["t_bo"] = nrm(next(ks), (L, 1, D))
    p["t_fw1"] = dense(next(ks), (L, D, F), D); p["t_fb1"] = nrm(next(ks), (L, 1, F))
    p["t_fw2"] = dense(next(ks), (L, F, D), F); p["t_fb2"] = nrm(next(ks), (L, 1, D))
    p["t_ln1g"] = jnp.ones((L, 1, D), jnp.float32); p["t_ln1b"] = nrm(next(ks), (L, 1, D))
    p["t_ln2g"] = jnp.ones((L, 1, D), jnp.float32); p["t_ln2b"] = nrm(next(ks), (L, 1, D))
    p["row_w"] = dense(next(ks), (GNN_OUT, 1), GNN_OUT); p["row_b"] = nrm(next(ks), (1,))
    p["agg_w"] = dense(next(ks), (GNN_OUT, N_AGG), GNN_OUT); p["agg_b"] = nrm(next(ks), (N_AGG,))
    p["fus_w"] = dense(next(ks), (GNN_OUT + D, FUSE_HID), GNN_OUT + D)
    p["fus_b"] = nrm(next(ks), (FUSE_HID,))
    p["out_w"] = dense(next(ks), (FUSE_HID, 1), FUSE_HID); p["out_b"] = nrm(next(ks), (1,))
    return p


def pack_params(p):
    """Pack all parameters into two contiguous f32 slabs (host-side, once)."""
    w = np.zeros((W_ROWS, W_LANES), np.float32)

    def put(name, arr, col=0, row=0):
        a = np.asarray(arr, np.float32)
        if a.ndim == 1:
            a = a[None, :]
        r0 = OFF_W[name] + row
        w[r0:r0 + a.shape[0], col:col + a.shape[1]] = a

    put("g_w1", p["g_w1"]); put("g_b1", p["g_b1"])
    put("g_w2", p["g_w2"]); put("g_b2", p["g_b2"])
    for l in range(N_LAYERS):
        for h in range(N_HEADS):
            sl = slice(h * HEAD_DIM, (h + 1) * HEAD_DIM)
            put(f"wq{l}_{h}", np.asarray(p["t_wq"])[l][:, sl])
            put(f"wk{l}_{h}", np.asarray(p["t_wk"])[l][:, sl])
            put(f"wv{l}_{h}", np.asarray(p["t_wv"])[l][:, sl])
        put(f"bq{l}", np.asarray(p["t_bq"])[l].reshape(N_HEADS, HEAD_DIM))
        put(f"bk{l}", np.asarray(p["t_bk"])[l].reshape(N_HEADS, HEAD_DIM))
        put(f"bv{l}", np.asarray(p["t_bv"])[l].reshape(N_HEADS, HEAD_DIM))
        put(f"wo{l}", np.asarray(p["t_wo"])[l]);   put(f"bo{l}", np.asarray(p["t_bo"])[l])
        put(f"ln1g{l}", np.asarray(p["t_ln1g"])[l]); put(f"ln1b{l}", np.asarray(p["t_ln1b"])[l])
        put(f"fw1{l}", np.asarray(p["t_fw1"])[l]); put(f"fb1{l}", np.asarray(p["t_fb1"])[l])
        put(f"fw2{l}", np.asarray(p["t_fw2"])[l]); put(f"fb2{l}", np.asarray(p["t_fb2"])[l])
        put(f"ln2g{l}", np.asarray(p["t_ln2g"])[l]); put(f"ln2b{l}", np.asarray(p["t_ln2b"])[l])
    # output heads, zero-padded lane-dense: main -> lane 0, row -> lane 1, agg -> lanes 2:6
    put("w_out", p["out_w"], col=0)
    put("w_row", p["row_w"], col=1)
    put("w_agg", p["agg_w"], col=2)
    bh = np.zeros((1, W_LANES), np.float32)
    bh[0, 0] = float(np.asarray(p["out_b"]).reshape(-1)[0])
    bh[0, 1] = float(np.asarray(p["row_b"]).reshape(-1)[0])
    bh[0, 2:2 + N_AGG] = np.asarray(p["agg_b"], np.float32).reshape(-1)
    put("b_head", bh)

    f = np.zeros((F_ROWS, FUSE_HID), np.float32)
    fw = np.asarray(p["fus_w"], np.float32)
    f[OFF_F["fus_wg"]:OFF_F["fus_wg"] + GNN_OUT, :] = fw[:GNN_OUT]
    f[OFF_F["fus_wt"]:OFF_F["fus_wt"] + INPUT_DIM, :] = fw[GNN_OUT:]
    f[OFF_F["fus_b"], :] = np.asarray(p["fus_b"], np.float32).reshape(-1)
    return jnp.asarray(w), jnp.asarray(f)


@jax.jit
def structrelnet_forward(node_feats, edge_index, slab_w, slab_f):
    n = node_feats.shape[0]
    adj = build_norm_adj(edge_index, n)
    vmem = pl.BlockSpec(memory_space=pltpu.MemorySpace.VMEM)
    out = pl.pallas_call(
        structrelnet_kernel,
        out_shape=jax.ShapeDtypeStruct((n, W_LANES), jnp.float32),  # lane-dense slab
        in_specs=[vmem, vmem, vmem, vmem],
        out_specs=vmem,
    )(node_feats.astype(jnp.float32), adj, slab_w, slab_f)
    main_logits = out[:, 0]            # [N]
    row_logits = out[:, 1]             # [N]
    agg_logits = out[0, 2:2 + N_AGG]   # [num_agg_classes]
    return main_logits, row_logits, agg_logits


# ----------------------------------- main ------------------------------------
if __name__ == "__main__":
    key = jax.random.PRNGKey(0)
    k_x, k_p = jax.random.split(key)

    node_feats = jax.random.normal(k_x, (N_NODES, INPUT_DIM), jnp.float32)
    # simple bidirectional ring graph over the N nodes
    src = jnp.arange(N_NODES, dtype=jnp.int32)
    dst = (src + 1) % N_NODES
    edge_index = jnp.stack(
        [jnp.concatenate([src, dst]), jnp.concatenate([dst, src])], axis=0
    )  # [2, 2N]

    params = init_params(k_p)
    slab_w, slab_f = pack_params(params)   # one-time host-side packing

    main_logits, row_logits, agg_logits = structrelnet_forward(
        node_feats, edge_index, slab_w, slab_f)
    jax.block_until_ready((main_logits, row_logits, agg_logits))

    assert main_logits.shape == (N_NODES,)
    assert row_logits.shape == (N_NODES,)
    assert agg_logits.shape == (N_AGG,)
    assert bool(jnp.all(jnp.isfinite(main_logits)))
    assert bool(jnp.all(jnp.isfinite(row_logits)))
    assert bool(jnp.all(jnp.isfinite(agg_logits)))
    print("KERNEL_OK")
</pallas_src>

<mosaic_0001>
module attributes {stable_mosaic.version = 11 : i64} {
  func.func @structrelnet_kernel(%arg0: memref<8x32xf32, #tpu.memory_space<vmem>>, %arg1: memref<8x8xf32, #tpu.memory_space<vmem>>, %arg2: memref<1672x128xf32, #tpu.memory_space<vmem>>, %arg3: memref<56x256xf32, #tpu.memory_space<vmem>>, %arg4: memref<8x128xf32, #tpu.memory_space<vmem>>) attributes {dimension_semantics = [], scalar_prefetch = 0 : i64, scratch_operands = 0 : i64, tpu.core_type = #tpu.core_type<tc>} {
    %c0 = arith.constant 0 : index
    %c0_0 = arith.constant 0 : index
    %0 = vector.load %arg0[%c0, %c0_0] : memref<8x32xf32, #tpu.memory_space<vmem>>, vector<8x32xf32>
    %c0_1 = arith.constant 0 : index
    %c0_2 = arith.constant 0 : index
    %1 = vector.load %arg1[%c0_1, %c0_2] : memref<8x8xf32, #tpu.memory_space<vmem>>, vector<8x8xf32>
    %c0_3 = arith.constant 0 : index
    %c0_4 = arith.constant 0 : index
    %2 = vector.load %arg2[%c0_3, %c0_4] : memref<1672x128xf32, #tpu.memory_space<vmem>>, vector<32x16xf32>
    %cst = arith.constant dense<0.000000e+00> : vector<8x16xf32>
    %3 = tpu.matmul %0, %2, %cst {dimension_numbers = #tpu.dot_dimension_numbers<[1], [0], [0], [1], [0, 0, 1, 1], [], []>} : vector<8x32xf32>, vector<32x16xf32>, vector<8x16xf32> -> vector<8x16xf32>
    %cst_5 = arith.constant dense<0.000000e+00> : vector<8x16xf32>
    %4 = tpu.matmul %1, %3, %cst_5 {dimension_numbers = #tpu.dot_dimension_numbers<[1], [0], [0], [1], [0, 0, 1, 1], [], []>} : vector<8x8xf32>, vector<8x16xf32>, vector<8x16xf32> -> vector<8x16xf32>
    %c32 = arith.constant 32 : index
    %c0_6 = arith.constant 0 : index
    %5 = vector.load %arg2[%c32, %c0_6] : memref<1672x128xf32, #tpu.memory_space<vmem>>, vector<1x16xf32>
    %6 = vector.broadcast %5 : vector<1x16xf32> to vector<8x16xf32>
    %7 = arith.addf %4, %6 : vector<8x16xf32>
    %cst_7 = arith.constant 0.000000e+00 : f32
    %8 = vector.broadcast %cst_7 : f32 to vector<8x16xf32>
    %9 = arith.maximumf %7, %8 : vector<8x16xf32>
    %c40 = arith.constant 40 : index
    %c0_8 = arith.constant 0 : index
    %10 = vector.load %arg2[%c40, %c0_8] : memref<1672x128xf32, #tpu.memory_space<vmem>>, vector<16x16xf32>
    %cst_9 = arith.constant dense<0.000000e+00> : vector<8x16xf32>
    %11 = tpu.matmul %9, %10, %cst_9 {dimension_numbers = #tpu.dot_dimension_numbers<[1], [0], [0], [1], [0, 0, 1, 1], [], []>} : vector<8x16xf32>, vector<16x16xf32>, vector<8x16xf32> -> vector<8x16xf32>
    %cst_10 = arith.constant dense<0.000000e+00> : vector<8x16xf32>
    %12 = tpu.matmul %1, %11, %cst_10 {dimension_numbers = #tpu.dot_dimension_numbers<[1], [0], [0], [1], [0, 0, 1, 1], [], []>} : vector<8x8xf32>, vector<8x16xf32>, vector<8x16xf32> -> vector<8x16xf32>
    %c56 = arith.constant 56 : index
    %c0_11 = arith.constant 0 : index
    %13 = vector.load %arg2[%c56, %c0_11] : memref<1672x128xf32, #tpu.memory_space<vmem>>, vector<1x16xf32>
    %14 = vector.broadcast %13 : vector<1x16xf32> to vector<8x16xf32>
    %15 = arith.addf %12, %14 : vector<8x16xf32>
    %16 = arith.addf %15, %9 : vector<8x16xf32>
    %cst_12 = arith.constant 0.000000e+00 : f32
    %17 = vector.broadcast %cst_12 : f32 to vector<8x32xf32>
    %c64 = arith.constant 64 : index
    %c0_13 = arith.constant 0 : index
    %18 = vector.load %arg2[%c64, %c0_13] : memref<1672x128xf32, #tpu.memory_space<vmem>>, vector<32x8xf32>
    %c96 = arith.constant 96 : index
    %c0_14 = arith.constant 0 : index
    %19 = vector.load %arg2[%c96, %c0_14] : memref<1672x128xf32, #tpu.memory_space<vmem>>, vector<32x8xf32>
    %c128 = arith.constant 128 : index
    %c0_15 = arith.constant 0 : index
    %20 = vector.load %arg2[%c128, %c0_15] : memref<1672x128xf32, #tpu.memory_space<vmem>>, vector<32x8xf32>
    %c448 = arith.constant 448 : index
    %c0_16 = arith.constant 0 : index
    %21 = vector.load %arg2[%c448, %c0_16] : memref<1672x128xf32, #tpu.memory_space<vmem>>, vector<1x8xf32>
    %c456 = arith.constant 456 : index
    %c0_17 = arith.constant 0 : index
    %22 = vector.load %arg2[%c456, %c0_17] : memref<1672x128xf32, #tpu.memory_space<vmem>>, vector<1x8xf32>
    %c464 = arith.constant 464 : index
    %c0_18 = arith.constant 0 : index
    %23 = vector.load %arg2[%c464, %c0_18] : memref<1672x128xf32, #tpu.memory_space<vmem>>, vector<1x8xf32>
    %cst_19 = arith.constant dense<0.000000e+00> : vector<8x8xf32>
    %24 = tpu.matmul %0, %18, %cst_19 {dimension_numbers = #tpu.dot_dimension_numbers<[1], [0], [0], [1], [0, 0, 1, 1], [], []>} : vector<8x32xf32>, vector<32x8xf32>, vector<8x8xf32> -> vector<8x8xf32>
    %25 = vector.broadcast %21 : vector<1x8xf32> to vector<8x8xf32>
    %26 = arith.addf %24, %25 : vector<8x8xf32>
    %cst_20 = arith.constant dense<0.000000e+00> : vector<8x8xf32>
    %27 = tpu.matmul %0, %19, %cst_20 {dimension_numbers = #tpu.dot_dimension_numbers<[1], [0], [0], [1], [0, 0, 1, 1], [], []>} : vector<8x32xf32>, vector<32x8xf32>, vector<8x8xf32> -> vector<8x8xf32>
    %28 = vector.broadcast %22 : vector<1x8xf32> to vector<8x8xf32>
    %29 = arith.addf %27, %28 : vector<8x8xf32>
    %cst_21 = arith.constant dense<0.000000e+00> : vector<8x8xf32>
    %30 = tpu.matmul %0, %20, %cst_21 {dimension_numbers = #tpu.dot_dimension_numbers<[1], [0], [0], [1], [0, 0, 1, 1], [], []>} : vector<8x32xf32>, vector<32x8xf32>, vector<8x8xf32> -> vector<8x8xf32>
    %31 = vector.broadcast %23 : vector<1x8xf32> to vector<8x8xf32>
    %32 = arith.addf %30, %31 : vector<8x8xf32>
    %cst_22 = arith.constant dense<0.000000e+00> : vector<8x8xf32>
    %33 = tpu.matmul %26, %29, %cst_22 {dimension_numbers = #tpu.dot_dimension_numbers<[1], [1], [0], [0], [0, 0, 1, 0], [], []>} : vector<8x8xf32>, vector<8x8xf32>, vector<8x8xf32> -> vector<8x8xf32>
    %cst_23 = arith.constant 0.353553385 : f32
    %34 = vector.broadcast %cst_23 : f32 to vector<8x8xf32>
    %35 = arith.mulf %33, %34 : vector<8x8xf32>
    %cst_24 = arith.constant dense<0xFF800000> : vector<8xf32>
    %36 = vector.multi_reduction <maximumf>, %35, %cst_24 [1] : vector<8x8xf32> to vector<8xf32>
    %37 = vector.shape_cast %36 : vector<8xf32> to vector<8x1xf32>
    %38 = vector.broadcast %37 : vector<8x1xf32> to vector<8x8xf32>
    %39 = arith.subf %35, %38 : vector<8x8xf32>
    %40 = math.exp %39 : vector<8x8xf32>
    %cst_25 = arith.constant dense<0.000000e+00> : vector<8xf32>
    %41 = vector.multi_reduction <add>, %40, %cst_25 [1] : vector<8x8xf32> to vector<8xf32>
    %42 = vector.shape_cast %41 : vector<8xf32> to vector<8x1xf32>
    %43 = tpu.reciprocal %42 {approx = true} : vector<8x1xf32> -> vector<8x1xf32>
    %44 = vector.broadcast %43 : vector<8x1xf32> to vector<8x8xf32>
    %45 = arith.mulf %40, %44 : vector<8x8xf32>
    %cst_26 = arith.constant dense<0.000000e+00> : vector<8x8xf32>
    %46 = tpu.matmul %45, %32, %cst_26 {dimension_numbers = #tpu.dot_dimension_numbers<[1], [0], [0], [1], [0, 0, 1, 1], [], []>} : vector<8x8xf32>, vector<8x8xf32>, vector<8x8xf32> -> vector<8x8xf32>
    %c472 = arith.constant 472 : index
    %c0_27 = arith.constant 0 : index
    %47 = vector.load %arg2[%c472, %c0_27] : memref<1672x128xf32, #tpu.memory_space<vmem>>, vector<8x32xf32>
    %cst_28 = arith.constant dense<0.000000e+00> : vector<8x32xf32>
    %48 = tpu.matmul %46, %47, %cst_28 {dimension_numbers = #tpu.dot_dimension_numbers<[1], [0], [0], [1], [0, 0, 1, 1], [], []>} : vector<8x8xf32>, vector<8x32xf32>, vector<8x32xf32> -> vector<8x32xf32>
    %49 = arith.addf %17, %48 : vector<8x32xf32>
    %c160 = arith.constant 160 : index
    %c0_29 = arith.constant 0 : index
    %50 = vector.load %arg2[%c160, %c0_29] : memref<1672x128xf32, #tpu.memory_space<vmem>>, vector<32x8xf32>
    %c192 = arith.constant 192 : index
    %c0_30 = arith.constant 0 : index
    %51 = vector.load %arg2[%c192, %c0_30] : memref<1672x128xf32, #tpu.memory_space<vmem>>, vector<32x8xf32>
    %c224 = arith.constant 224 : index
    %c0_31 = arith.constant 0 : index
    %52 = vector.load %arg2[%c224, %c0_31] : memref<1672x128xf32, #tpu.memory_space<vmem>>, vector<32x8xf32>
    %c449 = arith.constant 449 : index
    %c0_32 = arith.constant 0 : index
    %53 = vector.load %arg2[%c449, %c0_32] : memref<1672x128xf32, #tpu.memory_space<vmem>>, vector<1x8xf32>
    %c457 = arith.constant 457 : index
    %c0_33 = arith.constant 0 : index
    %54 = vector.load %arg2[%c457, %c0_33] : memref<1672x128xf32, #tpu.memory_space<vmem>>, vector<1x8xf32>
    %c465 = arith.constant 465 : index
    %c0_34 = arith.constant 0 : index
    %55 = vector.load %arg2[%c465, %c0_34] : memref<1672x128xf32, #tpu.memory_space<vmem>>, vector<1x8xf32>
    %cst_35 = arith.constant dense<0.000000e+00> : vector<8x8xf32>
    %56 = tpu.matmul %0, %50, %cst_35 {dimension_numbers = #tpu.dot_dimension_numbers<[1], [0], [0], [1], [0, 0, 1, 1], [], []>} : vector<8x32xf32>, vector<32x8xf32>, vector<8x8xf32> -> vector<8x8xf32>
    %57 = vector.broadcast %53 : vector<1x8xf32> to vector<8x8xf32>
    %58 = arith.addf %56, %57 : vector<8x8xf32>
    %cst_36 = arith.constant dense<0.000000e+00> : vector<8x8xf32>
    %59 = tpu.matmul %0, %51, %cst_36 {dimension_numbers = #tpu.dot_dimension_numbers<[1], [0], [0], [1], [0, 0, 1, 1], [], []>} : vector<8x32xf32>, vector<32x8xf32>, vector<8x8xf32> -> vector<8x8xf32>
    %60 = vector.broadcast %54 : vector<1x8xf32> to vector<8x8xf32>
    %61 = arith.addf %59, %60 : vector<8x8xf32>
    %cst_37 = arith.constant dense<0.000000e+00> : vector<8x8xf32>
    %62 = tpu.matmul %0, %52, %cst_37 {dimension_numbers = #tpu.dot_dimension_numbers<[1], [0], [0], [1], [0, 0, 1, 1], [], []>} : vector<8x32xf32>, vector<32x8xf32>, vector<8x8xf32> -> vector<8x8xf32>
    %63 = vector.broadcast %55 : vector<1x8xf32> to vector<8x8xf32>
    %64 = arith.addf %62, %63 : vector<8x8xf32>
    %cst_38 = arith.constant dense<0.000000e+00> : vector<8x8xf32>
    %65 = tpu.matmul %58, %61, %cst_38 {dimension_numbers = #tpu.dot_dimension_numbers<[1], [1], [0], [0], [0, 0, 1, 0], [], []>} : vector<8x8xf32>, vector<8x8xf32>, vector<8x8xf32> -> vector<8x8xf32>
    %cst_39 = arith.constant 0.353553385 : f32
    %66 = vector.broadcast %cst_39 : f32 to vector<8x8xf32>
    %67 = arith.mulf %65, %66 : vector<8x8xf32>
    %cst_40 = arith.constant dense<0xFF800000> : vector<8xf32>
    %68 = vector.multi_reduction <maximumf>, %67, %cst_40 [1] : vector<8x8xf32> to vector<8xf32>
    %69 = vector.shape_cast %68 : vector<8xf32> to vector<8x1xf32>
    %70 = vector.broadcast %69 : vector<8x1xf32> to vector<8x8xf32>
    %71 = arith.subf %67, %70 : vector<8x8xf32>
    %72 = math.exp %71 : vector<8x8xf32>
    %cst_41 = arith.constant dense<0.000000e+00> : vector<8xf32>
    %73 = vector.multi_reduction <add>, %72, %cst_41 [1] : vector<8x8xf32> to vector<8xf32>
    %74 = vector.shape_cast %73 : vector<8xf32> to vector<8x1xf32>
    %75 = tpu.reciprocal %74 {approx = true} : vector<8x1xf32> -> vector<8x1xf32>
    %76 = vector.broadcast %75 : vector<8x1xf32> to vector<8x8xf32>
    %77 = arith.mulf %72, %76 : vector<8x8xf32>
    %cst_42 = arith.constant dense<0.000000e+00> : vector<8x8xf32>
    %78 = tpu.matmul %77, %64, %cst_42 {dimension_numbers = #tpu.dot_dimension_numbers<[1], [0], [0], [1], [0, 0, 1, 1], [], []>} : vector<8x8xf32>, vector<8x8xf32>, vector<8x8xf32> -> vector<8x8xf32>
    %c480 = arith.constant 480 : index
    %c0_43 = arith.constant 0 : index
    %79 = vector.load %arg2[%c480, %c0_43] : memref<1672x128xf32, #tpu.memory_space<vmem>>, vector<8x32xf32>
    %cst_44 = arith.constant dense<0.000000e+00> : vector<8x32xf32>
    %80 = tpu.matmul %78, %79, %cst_44 {dimension_numbers = #tpu.dot_dimension_numbers<[1], [0], [0], [1], [0, 0, 1, 1], [], []>} : vector<8x8xf32>, vector<8x32xf32>, vector<8x32xf32> -> vector<8x32xf32>
    %81 = arith.addf %49, %80 : vector<8x32xf32>
    %c256 = arith.constant 256 : index
    %c0_45 = arith.constant 0 : index
    %82 = vector.load %arg2[%c256, %c0_45] : memref<1672x128xf32, #tpu.memory_space<vmem>>, vector<32x8xf32>
    %c288 = arith.constant 288 : index
    %c0_46 = arith.constant 0 : index
    %83 = vector.load %arg2[%c288, %c0_46] : memref<1672x128xf32, #tpu.memory_space<vmem>>, vector<32x8xf32>
    %c320 = arith.constant 320 : index
    %c0_47 = arith.constant 0 : index
    %84 = vector.load %arg2[%c320, %c0_47] : memref<1672x128xf32, #tpu.memory_space<vmem>>, vector<32x8xf32>
    %c450 = arith.constant 450 : index
    %c0_48 = arith.constant 0 : index
    %85 = vector.load %arg2[%c450, %c0_48] : memref<1672x128xf32, #tpu.memory_space<vmem>>, vector<1x8xf32>
    %c458 = arith.constant 458 : index
    %c0_49 = arith.constant 0 : index
    %86 = vector.load %arg2[%c458, %c0_49] : memref<1672x128xf32, #tpu.memory_space<vmem>>, vector<1x8xf32>
    %c466 = arith.constant 466 : index
    %c0_50 = arith.constant 0 : index
    %87 = vector.load %arg2[%c466, %c0_50] : memref<1672x128xf32, #tpu.memory_space<vmem>>, vector<1x8xf32>
    %cst_51 = arith.constant dense<0.000000e+00> : vector<8x8xf32>
    %88 = tpu.matmul %0, %82, %cst_51 {dimension_numbers = #tpu.dot_dimension_numbers<[1], [0], [0], [1], [0, 0, 1, 1], [], []>} : vector<8x32xf32>, vector<32x8xf32>, vector<8x8xf32> -> vector<8x8xf32>
    %89 = vector.broadcast %85 : vector<1x8xf32> to vector<8x8xf32>
    %90 = arith.addf %88, %89 : vector<8x8xf32>
    %cst_52 = arith.constant dense<0.000000e+00> : vector<8x8xf32>
    %91 = tpu.matmul %0, %83, %cst_52 {dimension_numbers = #tpu.dot_dimension_numbers<[1], [0], [0], [1], [0, 0, 1, 1], [], []>} : vector<8x32xf32>, vector<32x8xf32>, vector<8x8xf32> -> vector<8x8xf32>
    %92 = vector.broadcast %86 : vector<1x8xf32> to vector<8x8xf32>
    %93 = arith.addf %91, %92 : vector<8x8xf32>
    %cst_53 = arith.constant dense<0.000000e+00> : vector<8x8xf32>
    %94 = tpu.matmul %0, %84, %cst_53 {dimension_numbers = #tpu.dot_dimension_numbers<[1], [0], [0], [1], [0, 0, 1, 1], [], []>} : vector<8x32xf32>, vector<32x8xf32>, vector<8x8xf32> -> vector<8x8xf32>
    %95 = vector.broadcast %87 : vector<1x8xf32> to vector<8x8xf32>
    %96 = arith.addf %94, %95 : vector<8x8xf32>
    %cst_54 = arith.constant dense<0.000000e+00> : vector<8x8xf32>
    %97 = tpu.matmul %90, %93, %cst_54 {dimension_numbers = #tpu.dot_dimension_numbers<[1], [1], [0], [0], [0, 0, 1, 0], [], []>} : vector<8x8xf32>, vector<8x8xf32>, vector<8x8xf32> -> vector<8x8xf32>
    %cst_55 = arith.constant 0.353553385 : f32
    %98 = vector.broadcast %cst_55 : f32 to vector<8x8xf32>
    %99 = arith.mulf %97, %98 : vector<8x8xf32>
    %cst_56 = arith.constant dense<0xFF800000> : vector<8xf32>
    %100 = vector.multi_reduction <maximumf>, %99, %cst_56 [1] : vector<8x8xf32> to vector<8xf32>
    %101 = vector.shape_cast %100 : vector<8xf32> to vector<8x1xf32>
    %102 = vector.broadcast %101 : vector<8x1xf32> to vector<8x8xf32>
    %103 = arith.subf %99, %102 : vector<8x8xf32>
    %104 = math.exp %103 : vector<8x8xf32>
    %cst_57 = arith.constant dense<0.000000e+00> : vector<8xf32>
    %105 = vector.multi_reduction <add>, %104, %cst_57 [1] : vector<8x8xf32> to vector<8xf32>
    %106 = vector.shape_cast %105 : vector<8xf32> to vector<8x1xf32>
    %107 = tpu.reciprocal %106 {approx = true} : vector<8x1xf32> -> vector<8x1xf32>
    %108 = vector.broadcast %107 : vector<8x1xf32> to vector<8x8xf32>
    %109 = arith.mulf %104, %108 : vector<8x8xf32>
    %cst_58 = arith.constant dense<0.000000e+00> : vector<8x8xf32>
    %110 = tpu.matmul %109, %96, %cst_58 {dimension_numbers = #tpu.dot_dimension_numbers<[1], [0], [0], [1], [0, 0, 1, 1], [], []>} : vector<8x8xf32>, vector<8x8xf32>, vector<8x8xf32> -> vector<8x8xf32>
    %c488 = arith.constant 488 : index
    %c0_59 = arith.constant 0 : index
    %111 = vector.load %arg2[%c488, %c0_59] : memref<1672x128xf32, #tpu.memory_space<vmem>>, vector<8x32xf32>
    %cst_60 = arith.constant dense<0.000000e+00> : vector<8x32xf32>
    %112 = tpu.matmul %110, %111, %cst_60 {dimension_numbers = #tpu.dot_dimension_numbers<[1], [0], [0], [1], [0, 0, 1, 1], [], []>} : vector<8x8xf32>, vector<8x32xf32>, vector<8x32xf32> -> vector<8x32xf32>
    %113 = arith.addf %81, %112 : vector<8x32xf32>
    %c352 = arith.constant 352 : index
    %c0_61 = arith.constant 0 : index
    %114 = vector.load %arg2[%c352, %c0_61] : memref<1672x128xf32, #tpu.memory_space<vmem>>, vector<32x8xf32>
    %c384 = arith.constant 384 : index
    %c0_62 = arith.constant 0 : index
    %115 = vector.load %arg2[%c384, %c0_62] : memref<1672x128xf32, #tpu.memory_space<vmem>>, vector<32x8xf32>
    %c416 = arith.constant 416 : index
    %c0_63 = arith.constant 0 : index
    %116 = vector.load %arg2[%c416, %c0_63] : memref<1672x128xf32, #tpu.memory_space<vmem>>, vector<32x8xf32>
    %c451 = arith.constant 451 : index
    %c0_64 = arith.constant 0 : index
    %117 = vector.load %arg2[%c451, %c0_64] : memref<1672x128xf32, #tpu.memory_space<vmem>>, vector<1x8xf32>
    %c459 = arith.constant 459 : index
    %c0_65 = arith.constant 0 : index
    %118 = vector.load %arg2[%c459, %c0_65] : memref<1672x128xf32, #tpu.memory_space<vmem>>, vector<1x8xf32>
    %c467 = arith.constant 467 : index
    %c0_66 = arith.constant 0 : index
    %119 = vector.load %arg2[%c467, %c0_66] : memref<1672x128xf32, #tpu.memory_space<vmem>>, vector<1x8xf32>
    %cst_67 = arith.constant dense<0.000000e+00> : vector<8x8xf32>
    %120 = tpu.matmul %0, %114, %cst_67 {dimension_numbers = #tpu.dot_dimension_numbers<[1], [0], [0], [1], [0, 0, 1, 1], [], []>} : vector<8x32xf32>, vector<32x8xf32>, vector<8x8xf32> -> vector<8x8xf32>
    %121 = vector.broadcast %117 : vector<1x8xf32> to vector<8x8xf32>
    %122 = arith.addf %120, %121 : vector<8x8xf32>
    %cst_68 = arith.constant dense<0.000000e+00> : vector<8x8xf32>
    %123 = tpu.matmul %0, %115, %cst_68 {dimension_numbers = #tpu.dot_dimension_numbers<[1], [0], [0], [1], [0, 0, 1, 1], [], []>} : vector<8x32xf32>, vector<32x8xf32>, vector<8x8xf32> -> vector<8x8xf32>
    %124 = vector.broadcast %118 : vector<1x8xf32> to vector<8x8xf32>
    %125 = arith.addf %123, %124 : vector<8x8xf32>
    %cst_69 = arith.constant dense<0.000000e+00> : vector<8x8xf32>
    %126 = tpu.matmul %0, %116, %cst_69 {dimension_numbers = #tpu.dot_dimension_numbers<[1], [0], [0], [1], [0, 0, 1, 1], [], []>} : vector<8x32xf32>, vector<32x8xf32>, vector<8x8xf32> -> vector<8x8xf32>
    %127 = vector.broadcast %119 : vector<1x8xf32> to vector<8x8xf32>
    %128 = arith.addf %126, %127 : vector<8x8xf32>
    %cst_70 = arith.constant dense<0.000000e+00> : vector<8x8xf32>
    %129 = tpu.matmul %122, %125, %cst_70 {dimension_numbers = #tpu.dot_dimension_numbers<[1], [1], [0], [0], [0, 0, 1, 0], [], []>} : vector<8x8xf32>, vector<8x8xf32>, vector<8x8xf32> -> vector<8x8xf32>
    %cst_71 = arith.constant 0.353553385 : f32
    %130 = vector.broadcast %cst_71 : f32 to vector<8x8xf32>
    %131 = arith.mulf %129, %130 : vector<8x8xf32>
    %cst_72 = arith.constant dense<0xFF800000> : vector<8xf32>
    %132 = vector.multi_reduction <maximumf>, %131, %cst_72 [1] : vector<8x8xf32> to vector<8xf32>
    %133 = vector.shape_cast %132 : vector<8xf32> to vector<8x1xf32>
    %134 = vector.broadcast %133 : vector<8x1xf32> to vector<8x8xf32>
    %135 = arith.subf %131, %134 : vector<8x8xf32>
    %136 = math.exp %135 : vector<8x8xf32>
    %cst_73 = arith.constant dense<0.000000e+00> : vector<8xf32>
    %137 = vector.multi_reduction <add>, %136, %cst_73 [1] : vector<8x8xf32> to vector<8xf32>
    %138 = vector.shape_cast %137 : vector<8xf32> to vector<8x1xf32>
    %139 = tpu.reciprocal %138 {approx = true} : vector<8x1xf32> -> vector<8x1xf32>
    %140 = vector.broadcast %139 : vector<8x1xf32> to vector<8x8xf32>
    %141 = arith.mulf %136, %140 : vector<8x8xf32>
    %cst_74 = arith.constant dense<0.000000e+00> : vector<8x8xf32>
    %142 = tpu.matmul %141, %128, %cst_74 {dimension_numbers = #tpu.dot_dimension_numbers<[1], [0], [0], [1], [0, 0, 1, 1], [], []>} : vector<8x8xf32>, vector<8x8xf32>, vector<8x8xf32> -> vector<8x8xf32>
    %c496 = arith.constant 496 : index
    %c0_75 = arith.constant 0 : index
    %143 = vector.load %arg2[%c496, %c0_75] : memref<1672x128xf32, #tpu.memory_space<vmem>>, vector<8x32xf32>
    %cst_76 = arith.constant dense<0.000000e+00> : vector<8x32xf32>
    %144 = tpu.matmul %142, %143, %cst_76 {dimension_numbers = #tpu.dot_dimension_numbers<[1], [0], [0], [1], [0, 0, 1, 1], [], []>} : vector<8x8xf32>, vector<8x32xf32>, vector<8x32xf32> -> vector<8x32xf32>
    %145 = arith.addf %113, %144 : vector<8x32xf32>
    %c504 = arith.constant 504 : index
    %c0_77 = arith.constant 0 : index
    %146 = vector.load %arg2[%c504, %c0_77] : memref<1672x128xf32, #tpu.memory_space<vmem>>, vector<1x32xf32>
    %147 = vector.broadcast %146 : vector<1x32xf32> to vector<8x32xf32>
    %148 = arith.addf %145, %147 : vector<8x32xf32>
    %149 = arith.addf %0, %148 : vector<8x32xf32>
    %c512 = arith.constant 512 : index
    %c0_78 = arith.constant 0 : index
    %150 = vector.load %arg2[%c512, %c0_78] : memref<1672x128xf32, #tpu.memory_space<vmem>>, vector<1x32xf32>
    %c520 = arith.constant 520 : index
    %c0_79 = arith.constant 0 : index
    %151 = vector.load %arg2[%c520, %c0_79] : memref<1672x128xf32, #tpu.memory_space<vmem>>, vector<1x32xf32>
    %cst_80 = arith.constant dense<0.000000e+00> : vector<8xf32>
    %152 = vector.multi_reduction <add>, %149, %cst_80 [1] : vector<8x32xf32> to vector<8xf32>
    %153 = vector.shape_cast %152 : vector<8xf32> to vector<8x1xf32>
    %cst_81 = arith.constant 3.200000e+01 : f32
    %154 = vector.broadcast %cst_81 : f32 to vector<8x1xf32>
    %155 = arith.divf %153, %154 : vector<8x1xf32>
    %156 = vector.broadcast %155 : vector<8x1xf32> to vector<8x32xf32>
    %157 = arith.subf %149, %156 : vector<8x32xf32>
    %158 = arith.mulf %157, %157 : vector<8x32xf32>
    %cst_82 = arith.constant dense<0.000000e+00> : vector<8xf32>
    %159 = vector.multi_reduction <add>, %158, %cst_82 [1] : vector<8x32xf32> to vector<8xf32>
    %160 = vector.shape_cast %159 : vector<8xf32> to vector<8x1xf32>
    %cst_83 = arith.constant 3.200000e+01 : f32
    %161 = vector.broadcast %cst_83 : f32 to vector<8x1xf32>
    %162 = arith.divf %160, %161 : vector<8x1xf32>
    %cst_84 = arith.constant 9.99999974E-6 : f32
    %163 = vector.broadcast %cst_84 : f32 to vector<8x1xf32>
    %164 = arith.addf %162, %163 : vector<8x1xf32>
    %165 = math.rsqrt %164 : vector<8x1xf32>
    %166 = vector.broadcast %165 : vector<8x1xf32> to vector<8x32xf32>
    %167 = arith.mulf %157, %166 : vector<8x32xf32>
    %168 = vector.broadcast %150 : vector<1x32xf32> to vector<8x32xf32>
    %169 = arith.mulf %167, %168 : vector<8x32xf32>
    %170 = vector.broadcast %151 : vector<1x32xf32> to vector<8x32xf32>
    %171 = arith.addf %169, %170 : vector<8x32xf32>
    %c528 = arith.constant 528 : index
    %c0_85 = arith.constant 0 : index
    %172 = vector.load %arg2[%c528, %c0_85] : memref<1672x128xf32, #tpu.memory_space<vmem>>, vector<32x128xf32>
    %cst_86 = arith.constant dense<0.000000e+00> : vector<8x128xf32>
    %173 = tpu.matmul %171, %172, %cst_86 {dimension_numbers = #tpu.dot_dimension_numbers<[1], [0], [0], [1], [0, 0, 1, 1], [], []>} : vector<8x32xf32>, vector<32x128xf32>, vector<8x128xf32> -> vector<8x128xf32>
    %c560 = arith.constant 560 : index
    %c0_87 = arith.constant 0 : index
    %174 = vector.load %arg2[%c560, %c0_87] : memref<1672x128xf32, #tpu.memory_space<vmem>>, vector<1x128xf32>
    %175 = vector.broadcast %174 : vector<1x128xf32> to vector<8x128xf32>
    %176 = arith.addf %173, %175 : vector<8x128xf32>
    %cst_88 = arith.constant 0.000000e+00 : f32
    %177 = vector.broadcast %cst_88 : f32 to vector<8x128xf32>
    %178 = arith.maximumf %176, %177 : vector<8x128xf32>
    %c568 = arith.constant 568 : index
    %c0_89 = arith.constant 0 : index
    %179 = vector.load %arg2[%c568, %c0_89] : memref<1672x128xf32, #tpu.memory_space<vmem>>, vector<128x32xf32>
    %cst_90 = arith.constant dense<0.000000e+00> : vector<8x32xf32>
    %180 = tpu.matmul %178, %179, %cst_90 {dimension_numbers = #tpu.dot_dimension_numbers<[1], [0], [0], [1], [0, 0, 1, 1], [], []>} : vector<8x128xf32>, vector<128x32xf32>, vector<8x32xf32> -> vector<8x32xf32>
    %c696 = arith.constant 696 : index
    %c0_91 = arith.constant 0 : index
    %181 = vector.load %arg2[%c696, %c0_91] : memref<1672x128xf32, #tpu.memory_space<vmem>>, vector<1x32xf32>
    %182 = vector.broadcast %181 : vector<1x32xf32> to vector<8x32xf32>
    %183 = arith.addf %180, %182 : vector<8x32xf32>
    %184 = arith.addf %171, %183 : vector<8x32xf32>
    %c704 = arith.constant 704 : index
    %c0_92 = arith.constant 0 : index
    %185 = vector.load %arg2[%c704, %c0_92] : memref<1672x128xf32, #tpu.memory_space<vmem>>, vector<1x32xf32>
    %c712 = arith.constant 712 : index
    %c0_93 = arith.constant 0 : index
    %186 = vector.load %arg2[%c712, %c0_93] : memref<1672x128xf32, #tpu.memory_space<vmem>>, vector<1x32xf32>
    %cst_94 = arith.constant dense<0.000000e+00> : vector<8xf32>
    %187 = vector.multi_reduction <add>, %184, %cst_94 [1] : vector<8x32xf32> to vector<8xf32>
    %188 = vector.shape_cast %187 : vector<8xf32> to vector<8x1xf32>
    %cst_95 = arith.constant 3.200000e+01 : f32
    %189 = vector.broadcast %cst_95 : f32 to vector<8x1xf32>
    %190 = arith.divf %188, %189 : vector<8x1xf32>
    %191 = vector.broadcast %190 : vector<8x1xf32> to vector<8x32xf32>
    %192 = arith.subf %184, %191 : vector<8x32xf32>
    %193 = arith.mulf %192, %192 : vector<8x32xf32>
    %cst_96 = arith.constant dense<0.000000e+00> : vector<8xf32>
    %194 = vector.multi_reduction <add>, %193, %cst_96 [1] : vector<8x32xf32> to vector<8xf32>
    %195 = vector.shape_cast %194 : vector<8xf32> to vector<8x1xf32>
    %cst_97 = arith.constant 3.200000e+01 : f32
    %196 = vector.broadcast %cst_97 : f32 to vector<8x1xf32>
    %197 = arith.divf %195, %196 : vector<8x1xf32>
    %cst_98 = arith.constant 9.99999974E-6 : f32
    %198 = vector.broadcast %cst_98 : f32 to vector<8x1xf32>
    %199 = arith.addf %197, %198 : vector<8x1xf32>
    %200 = math.rsqrt %199 : vector<8x1xf32>
    %201 = vector.broadcast %200 : vector<8x1xf32> to vector<8x32xf32>
    %202 = arith.mulf %192, %201 : vector<8x32xf32>
    %203 = vector.broadcast %185 : vector<1x32xf32> to vector<8x32xf32>
    %204 = arith.mulf %202, %203 : vector<8x32xf32>
    %205 = vector.broadcast %186 : vector<1x32xf32> to vector<8x32xf32>
    %206 = arith.addf %204, %205 : vector<8x32xf32>
    %cst_99 = arith.constant 0.000000e+00 : f32
    %207 = vector.broadcast %cst_99 : f32 to vector<8x32xf32>
    %c720 = arith.constant 720 : index
    %c0_100 = arith.constant 0 : index
    %208 = vector.load %arg2[%c720, %c0_100] : memref<1672x128xf32, #tpu.memory_space<vmem>>, vector<32x8xf32>
    %c752 = arith.constant 752 : index
    %c0_101 = arith.constant 0 : index
    %209 = vector.load %arg2[%c752, %c0_101] : memref<1672x128xf32, #tpu.memory_space<vmem>>, vector<32x8xf32>
    %c784 = arith.constant 784 : index
    %c0_102 = arith.constant 0 : index
    %210 = vector.load %arg2[%c784, %c0_102] : memref<1672x128xf32, #tpu.memory_space<vmem>>, vector<32x8xf32>
    %c1104 = arith.constant 1104 : index
    %c0_103 = arith.constant 0 : index
    %211 = vector.load %arg2[%c1104, %c0_103] : memref<1672x128xf32, #tpu.memory_space<vmem>>, vector<1x8xf32>
    %c1112 = arith.constant 1112 : index
    %c0_104 = arith.constant 0 : index
    %212 = vector.load %arg2[%c1112, %c0_104] : memref<1672x128xf32, #tpu.memory_space<vmem>>, vector<1x8xf32>
    %c1120 = arith.constant 1120 : index
    %c0_105 = arith.constant 0 : index
    %213 = vector.load %arg2[%c1120, %c0_105] : memref<1672x128xf32, #tpu.memory_space<vmem>>, vector<1x8xf32>
    %cst_106 = arith.constant dense<0.000000e+00> : vector<8x8xf32>
    %214 = tpu.matmul %206, %208, %cst_106 {dimension_numbers = #tpu.dot_dimension_numbers<[1], [0], [0], [1], [0, 0, 1, 1], [], []>} : vector<8x32xf32>, vector<32x8xf32>, vector<8x8xf32> -> vector<8x8xf32>
    %215 = vector.broadcast %211 : vector<1x8xf32> to vector<8x8xf32>
    %216 = arith.addf %214, %215 : vector<8x8xf32>
    %cst_107 = arith.constant dense<0.000000e+00> : vector<8x8xf32>
    %217 = tpu.matmul %206, %209, %cst_107 {dimension_numbers = #tpu.dot_dimension_numbers<[1], [0], [0], [1], [0, 0, 1, 1], [], []>} : vector<8x32xf32>, vector<32x8xf32>, vector<8x8xf32> -> vector<8x8xf32>
    %218 = vector.broadcast %212 : vector<1x8xf32> to vector<8x8xf32>
    %219 = arith.addf %217, %218 : vector<8x8xf32>
    %cst_108 = arith.constant dense<0.000000e+00> : vector<8x8xf32>
    %220 = tpu.matmul %206, %210, %cst_108 {dimension_numbers = #tpu.dot_dimension_numbers<[1], [0], [0], [1], [0, 0, 1, 1], [], []>} : vector<8x32xf32>, vector<32x8xf32>, vector<8x8xf32> -> vector<8x8xf32>
    %221 = vector.broadcast %213 : vector<1x8xf32> to vector<8x8xf32>
    %222 = arith.addf %220, %221 : vector<8x8xf32>
    %cst_109 = arith.constant dense<0.000000e+00> : vector<8x8xf32>
    %223 = tpu.matmul %216, %219, %cst_109 {dimension_numbers = #tpu.dot_dimension_numbers<[1], [1], [0], [0], [0, 0, 1, 0], [], []>} : vector<8x8xf32>, vector<8x8xf32>, vector<8x8xf32> -> vector<8x8xf32>
    %cst_110 = arith.constant 0.353553385 : f32
    %224 = vector.broadcast %cst_110 : f32 to vector<8x8xf32>
    %225 = arith.mulf %223, %224 : vector<8x8xf32>
    %cst_111 = arith.constant dense<0xFF800000> : vector<8xf32>
    %226 = vector.multi_reduction <maximumf>, %225, %cst_111 [1] : vector<8x8xf32> to vector<8xf32>
    %227 = vector.shape_cast %226 : vector<8xf32> to vector<8x1xf32>
    %228 = vector.broadcast %227 : vector<8x1xf32> to vector<8x8xf32>
    %229 = arith.subf %225, %228 : vector<8x8xf32>
    %230 = math.exp %229 : vector<8x8xf32>
    %cst_112 = arith.constant dense<0.000000e+00> : vector<8xf32>
    %231 = vector.multi_reduction <add>, %230, %cst_112 [1] : vector<8x8xf32> to vector<8xf32>
    %232 = vector.shape_cast %231 : vector<8xf32> to vector<8x1xf32>
    %233 = tpu.reciprocal %232 {approx = true} : vector<8x1xf32> -> vector<8x1xf32>
    %234 = vector.broadcast %233 : vector<8x1xf32> to vector<8x8xf32>
    %235 = arith.mulf %230, %234 : vector<8x8xf32>
    %cst_113 = arith.constant dense<0.000000e+00> : vector<8x8xf32>
    %236 = tpu.matmul %235, %222, %cst_113 {dimension_numbers = #tpu.dot_dimension_numbers<[1], [0], [0], [1], [0, 0, 1, 1], [], []>} : vector<8x8xf32>, vector<8x8xf32>, vector<8x8xf32> -> vector<8x8xf32>
    %c1128 = arith.constant 1128 : index
    %c0_114 = arith.constant 0 : index
    %237 = vector.load %arg2[%c1128, %c0_114] : memref<1672x128xf32, #tpu.memory_space<vmem>>, vector<8x32xf32>
    %cst_115 = arith.constant dense<0.000000e+00> : vector<8x32xf32>
    %238 = tpu.matmul %236, %237, %cst_115 {dimension_numbers = #tpu.dot_dimension_numbers<[1], [0], [0], [1], [0, 0, 1, 1], [], []>} : vector<8x8xf32>, vector<8x32xf32>, vector<8x32xf32> -> vector<8x32xf32>
    %239 = arith.addf %207, %238 : vector<8x32xf32>
    %c816 = arith.constant 816 : index
    %c0_116 = arith.constant 0 : index
    %240 = vector.load %arg2[%c816, %c0_116] : memref<1672x128xf32, #tpu.memory_space<vmem>>, vector<32x8xf32>
    %c848 = arith.constant 848 : index
    %c0_117 = arith.constant 0 : index
    %241 = vector.load %arg2[%c848, %c0_117] : memref<1672x128xf32, #tpu.memory_space<vmem>>, vector<32x8xf32>
    %c880 = arith.constant 880 : index
    %c0_118 = arith.constant 0 : index
    %242 = vector.load %arg2[%c880, %c0_118] : memref<1672x128xf32, #tpu.memory_space<vmem>>, vector<32x8xf32>
    %c1105 = arith.constant 1105 : index
    %c0_119 = arith.constant 0 : index
    %243 = vector.load %arg2[%c1105, %c0_119] : memref<1672x128xf32, #tpu.memory_space<vmem>>, vector<1x8xf32>
    %c1113 = arith.constant 1113 : index
    %c0_120 = arith.constant 0 : index
    %244 = vector.load %arg2[%c1113, %c0_120] : memref<1672x128xf32, #tpu.memory_space<vmem>>, vector<1x8xf32>
    %c1121 = arith.constant 1121 : index
    %c0_121 = arith.constant 0 : index
    %245 = vector.load %arg2[%c1121, %c0_121] : memref<1672x128xf32, #tpu.memory_space<vmem>>, vector<1x8xf32>
    %cst_122 = arith.constant dense<0.000000e+00> : vector<8x8xf32>
    %246 = tpu.matmul %206, %240, %cst_122 {dimension_numbers = #tpu.dot_dimension_numbers<[1], [0], [0], [1], [0, 0, 1, 1], [], []>} : vector<8x32xf32>, vector<32x8xf32>, vector<8x8xf32> -> vector<8x8xf32>
    %247 = vector.broadcast %243 : vector<1x8xf32> to vector<8x8xf32>
    %248 = arith.addf %246, %247 : vector<8x8xf32>
    %cst_123 = arith.constant dense<0.000000e+00> : vector<8x8xf32>
    %249 = tpu.matmul %206, %241, %cst_123 {dimension_numbers = #tpu.dot_dimension_numbers<[1], [0], [0], [1], [0, 0, 1, 1], [], []>} : vector<8x32xf32>, vector<32x8xf32>, vector<8x8xf32> -> vector<8x8xf32>
    %250 = vector.broadcast %244 : vector<1x8xf32> to vector<8x8xf32>
    %251 = arith.addf %249, %250 : vector<8x8xf32>
    %cst_124 = arith.constant dense<0.000000e+00> : vector<8x8xf32>
    %252 = tpu.matmul %206, %242, %cst_124 {dimension_numbers = #tpu.dot_dimension_numbers<[1], [0], [0], [1], [0, 0, 1, 1], [], []>} : vector<8x32xf32>, vector<32x8xf32>, vector<8x8xf32> -> vector<8x8xf32>
    %253 = vector.broadcast %245 : vector<1x8xf32> to vector<8x8xf32>
    %254 = arith.addf %252, %253 : vector<8x8xf32>
    %cst_125 = arith.constant dense<0.000000e+00> : vector<8x8xf32>
    %255 = tpu.matmul %248, %251, %cst_125 {dimension_numbers = #tpu.dot_dimension_numbers<[1], [1], [0], [0], [0, 0, 1, 0], [], []>} : vector<8x8xf32>, vector<8x8xf32>, vector<8x8xf32> -> vector<8x8xf32>
    %cst_126 = arith.constant 0.353553385 : f32
    %256 = vector.broadcast %cst_126 : f32 to vector<8x8xf32>
    %257 = arith.mulf %255, %256 : vector<8x8xf32>
    %cst_127 = arith.constant dense<0xFF800000> : vector<8xf32>
    %258 = vector.multi_reduction <maximumf>, %257, %cst_127 [1] : vector<8x8xf32> to vector<8xf32>
    %259 = vector.shape_cast %258 : vector<8xf32> to vector<8x1xf32>
    %260 = vector.broadcast %259 : vector<8x1xf32> to vector<8x8xf32>
    %261 = arith.subf %257, %260 : vector<8x8xf32>
    %262 = math.exp %261 : vector<8x8xf32>
    %cst_128 = arith.constant dense<0.000000e+00> : vector<8xf32>
    %263 = vector.multi_reduction <add>, %262, %cst_128 [1] : vector<8x8xf32> to vector<8xf32>
    %264 = vector.shape_cast %263 : vector<8xf32> to vector<8x1xf32>
    %265 = tpu.reciprocal %264 {approx = true} : vector<8x1xf32> -> vector<8x1xf32>
    %266 = vector.broadcast %265 : vector<8x1xf32> to vector<8x8xf32>
    %267 = arith.mulf %262, %266 : vector<8x8xf32>
    %cst_129 = arith.constant dense<0.000000e+00> : vector<8x8xf32>
    %268 = tpu.matmul %267, %254, %cst_129 {dimension_numbers = #tpu.dot_dimension_numbers<[1], [0], [0], [1], [0, 0, 1, 1], [], []>} : vector<8x8xf32>, vector<8x8xf32>, vector<8x8xf32> -> vector<8x8xf32>
    %c1136 = arith.constant 1136 : index
    %c0_130 = arith.constant 0 : index
    %269 = vector.load %arg2[%c1136, %c0_130] : memref<1672x128xf32, #tpu.memory_space<vmem>>, vector<8x32xf32>
    %cst_131 = arith.constant dense<0.000000e+00> : vector<8x32xf32>
    %270 = tpu.matmul %268, %269, %cst_131 {dimension_numbers = #tpu.dot_dimension_numbers<[1], [0], [0], [1], [0, 0, 1, 1], [], []>} : vector<8x8xf32>, vector<8x32xf32>, vector<8x32xf32> -> vector<8x32xf32>
    %271 = arith.addf %239, %270 : vector<8x32xf32>
    %c912 = arith.constant 912 : index
    %c0_132 = arith.constant 0 : index
    %272 = vector.load %arg2[%c912, %c0_132] : memref<1672x128xf32, #tpu.memory_space<vmem>>, vector<32x8xf32>
    %c944 = arith.constant 944 : index
    %c0_133 = arith.constant 0 : index
    %273 = vector.load %arg2[%c944, %c0_133] : memref<1672x128xf32, #tpu.memory_space<vmem>>, vector<32x8xf32>
    %c976 = arith.constant 976 : index
    %c0_134 = arith.constant 0 : index
    %274 = vector.load %arg2[%c976, %c0_134] : memref<1672x128xf32, #tpu.memory_space<vmem>>, vector<32x8xf32>
    %c1106 = arith.constant 1106 : index
    %c0_135 = arith.constant 0 : index
    %275 = vector.load %arg2[%c1106, %c0_135] : memref<1672x128xf32, #tpu.memory_space<vmem>>, vector<1x8xf32>
    %c1114 = arith.constant 1114 : index
    %c0_136 = arith.constant 0 : index
    %276 = vector.load %arg2[%c1114, %c0_136] : memref<1672x128xf32, #tpu.memory_space<vmem>>, vector<1x8xf32>
    %c1122 = arith.constant 1122 : index
    %c0_137 = arith.constant 0 : index
    %277 = vector.load %arg2[%c1122, %c0_137] : memref<1672x128xf32, #tpu.memory_space<vmem>>, vector<1x8xf32>
    %cst_138 = arith.constant dense<0.000000e+00> : vector<8x8xf32>
    %278 = tpu.matmul %206, %272, %cst_138 {dimension_numbers = #tpu.dot_dimension_numbers<[1], [0], [0], [1], [0, 0, 1, 1], [], []>} : vector<8x32xf32>, vector<32x8xf32>, vector<8x8xf32> -> vector<8x8xf32>
    %279 = vector.broadcast %275 : vector<1x8xf32> to vector<8x8xf32>
    %280 = arith.addf %278, %279 : vector<8x8xf32>
    %cst_139 = arith.constant dense<0.000000e+00> : vector<8x8xf32>
    %281 = tpu.matmul %206, %273, %cst_139 {dimension_numbers = #tpu.dot_dimension_numbers<[1], [0], [0], [1], [0, 0, 1, 1], [], []>} : vector<8x32xf32>, vector<32x8xf32>, vector<8x8xf32> -> vector<8x8xf32>
    %282 = vector.broadcast %276 : vector<1x8xf32> to vector<8x8xf32>
    %283 = arith.addf %281, %282 : vector<8x8xf32>
    %cst_140 = arith.constant dense<0.000000e+00> : vector<8x8xf32>
    %284 = tpu.matmul %206, %274, %cst_140 {dimension_numbers = #tpu.dot_dimension_numbers<[1], [0], [0], [1], [0, 0, 1, 1], [], []>} : vector<8x32xf32>, vector<32x8xf32>, vector<8x8xf32> -> vector<8x8xf32>
    %285 = vector.broadcast %277 : vector<1x8xf32> to vector<8x8xf32>
    %286 = arith.addf %284, %285 : vector<8x8xf32>
    %cst_141 = arith.constant dense<0.000000e+00> : vector<8x8xf32>
    %287 = tpu.matmul %280, %283, %cst_141 {dimension_numbers = #tpu.dot_dimension_numbers<[1], [1], [0], [0], [0, 0, 1, 0], [], []>} : vector<8x8xf32>, vector<8x8xf32>, vector<8x8xf32> -> vector<8x8xf32>
    %cst_142 = arith.constant 0.353553385 : f32
    %288 = vector.broadcast %cst_142 : f32 to vector<8x8xf32>
    %289 = arith.mulf %287, %288 : vector<8x8xf32>
    %cst_143 = arith.constant dense<0xFF800000> : vector<8xf32>
    %290 = vector.multi_reduction <maximumf>, %289, %cst_143 [1] : vector<8x8xf32> to vector<8xf32>
    %291 = vector.shape_cast %290 : vector<8xf32> to vector<8x1xf32>
    %292 = vector.broadcast %291 : vector<8x1xf32> to vector<8x8xf32>
    %293 = arith.subf %289, %292 : vector<8x8xf32>
    %294 = math.exp %293 : vector<8x8xf32>
    %cst_144 = arith.constant dense<0.000000e+00> : vector<8xf32>
    %295 = vector.multi_reduction <add>, %294, %cst_144 [1] : vector<8x8xf32> to vector<8xf32>
    %296 = vector.shape_cast %295 : vector<8xf32> to vector<8x1xf32>
    %297 = tpu.reciprocal %296 {approx = true} : vector<8x1xf32> -> vector<8x1xf32>
    %298 = vector.broadcast %297 : vector<8x1xf32> to vector<8x8xf32>
    %299 = arith.mulf %294, %298 : vector<8x8xf32>
    %cst_145 = arith.constant dense<0.000000e+00> : vector<8x8xf32>
    %300 = tpu.matmul %299, %286, %cst_145 {dimension_numbers = #tpu.dot_dimension_numbers<[1], [0], [0], [1], [0, 0, 1, 1], [], []>} : vector<8x8xf32>, vector<8x8xf32>, vector<8x8xf32> -> vector<8x8xf32>
    %c1144 = arith.constant 1144 : index
    %c0_146 = arith.constant 0 : index
    %301 = vector.load %arg2[%c1144, %c0_146] : memref<1672x128xf32, #tpu.memory_space<vmem>>, vector<8x32xf32>
    %cst_147 = arith.constant dense<0.000000e+00> : vector<8x32xf32>
    %302 = tpu.matmul %300, %301, %cst_147 {dimension_numbers = #tpu.dot_dimension_numbers<[1], [0], [0], [1], [0, 0, 1, 1], [], []>} : vector<8x8xf32>, vector<8x32xf32>, vector<8x32xf32> -> vector<8x32xf32>
    %303 = arith.addf %271, %302 : vector<8x32xf32>
    %c1008 = arith.constant 1008 : index
    %c0_148 = arith.constant 0 : index
    %304 = vector.load %arg2[%c1008, %c0_148] : memref<1672x128xf32, #tpu.memory_space<vmem>>, vector<32x8xf32>
    %c1040 = arith.constant 1040 : index
    %c0_149 = arith.constant 0 : index
    %305 = vector.load %arg2[%c1040, %c0_149] : memref<1672x128xf32, #tpu.memory_space<vmem>>, vector<32x8xf32>
    %c1072 = arith.constant 1072 : index
    %c0_150 = arith.constant 0 : index
    %306 = vector.load %arg2[%c1072, %c0_150] : memref<1672x128xf32, #tpu.memory_space<vmem>>, vector<32x8xf32>
    %c1107 = arith.constant 1107 : index
    %c0_151 = arith.constant 0 : index
    %307 = vector.load %arg2[%c1107, %c0_151] : memref<1672x128xf32, #tpu.memory_space<vmem>>, vector<1x8xf32>
    %c1115 = arith.constant 1115 : index
    %c0_152 = arith.constant 0 : index
    %308 = vector.load %arg2[%c1115, %c0_152] : memref<1672x128xf32, #tpu.memory_space<vmem>>, vector<1x8xf32>
    %c1123 = arith.constant 1123 : index
    %c0_153 = arith.constant 0 : index
    %309 = vector.load %arg2[%c1123, %c0_153] : memref<1672x128xf32, #tpu.memory_space<vmem>>, vector<1x8xf32>
    %cst_154 = arith.constant dense<0.000000e+00> : vector<8x8xf32>
    %310 = tpu.matmul %206, %304, %cst_154 {dimension_numbers = #tpu.dot_dimension_numbers<[1], [0], [0], [1], [0, 0, 1, 1], [], []>} : vector<8x32xf32>, vector<32x8xf32>, vector<8x8xf32> -> vector<8x8xf32>
    %311 = vector.broadcast %307 : vector<1x8xf32> to vector<8x8xf32>
    %312 = arith.addf %310, %311 : vector<8x8xf32>
    %cst_155 = arith.constant dense<0.000000e+00> : vector<8x8xf32>
    %313 = tpu.matmul %206, %305, %cst_155 {dimension_numbers = #tpu.dot_dimension_numbers<[1], [0], [0], [1], [0, 0, 1, 1], [], []>} : vector<8x32xf32>, vector<32x8xf32>, vector<8x8xf32> -> vector<8x8xf32>
    %314 = vector.broadcast %308 : vector<1x8xf32> to vector<8x8xf32>
    %315 = arith.addf %313, %314 : vector<8x8xf32>
    %cst_156 = arith.constant dense<0.000000e+00> : vector<8x8xf32>
    %316 = tpu.matmul %206, %306, %cst_156 {dimension_numbers = #tpu.dot_dimension_numbers<[1], [0], [0], [1], [0, 0, 1, 1], [], []>} : vector<8x32xf32>, vector<32x8xf32>, vector<8x8xf32> -> vector<8x8xf32>
    %317 = vector.broadcast %309 : vector<1x8xf32> to vector<8x8xf32>
    %318 = arith.addf %316, %317 : vector<8x8xf32>
    %cst_157 = arith.constant dense<0.000000e+00> : vector<8x8xf32>
    %319 = tpu.matmul %312, %315, %cst_157 {dimension_numbers = #tpu.dot_dimension_numbers<[1], [1], [0], [0], [0, 0, 1, 0], [], []>} : vector<8x8xf32>, vector<8x8xf32>, vector<8x8xf32> -> vector<8x8xf32>
    %cst_158 = arith.constant 0.353553385 : f32
    %320 = vector.broadcast %cst_158 : f32 to vector<8x8xf32>
    %321 = arith.mulf %319, %320 : vector<8x8xf32>
    %cst_159 = arith.constant dense<0xFF800000> : vector<8xf32>
    %322 = vector.multi_reduction <maximumf>, %321, %cst_159 [1] : vector<8x8xf32> to vector<8xf32>
    %323 = vector.shape_cast %322 : vector<8xf32> to vector<8x1xf32>
    %324 = vector.broadcast %323 : vector<8x1xf32> to vector<8x8xf32>
    %325 = arith.subf %321, %324 : vector<8x8xf32>
    %326 = math.exp %325 : vector<8x8xf32>
    %cst_160 = arith.constant dense<0.000000e+00> : vector<8xf32>
    %327 = vector.multi_reduction <add>, %326, %cst_160 [1] : vector<8x8xf32> to vector<8xf32>
    %328 = vector.shape_cast %327 : vector<8xf32> to vector<8x1xf32>
    %329 = tpu.reciprocal %328 {approx = true} : vector<8x1xf32> -> vector<8x1xf32>
    %330 = vector.broadcast %329 : vector<8x1xf32> to vector<8x8xf32>
    %331 = arith.mulf %326, %330 : vector<8x8xf32>
    %cst_161 = arith.constant dense<0.000000e+00> : vector<8x8xf32>
    %332 = tpu.matmul %331, %318, %cst_161 {dimension_numbers = #tpu.dot_dimension_numbers<[1], [0], [0], [1], [0, 0, 1, 1], [], []>} : vector<8x8xf32>, vector<8x8xf32>, vector<8x8xf32> -> vector<8x8xf32>
    %c1152 = arith.constant 1152 : index
    %c0_162 = arith.constant 0 : index
    %333 = vector.load %arg2[%c1152, %c0_162] : memref<1672x128xf32, #tpu.memory_space<vmem>>, vector<8x32xf32>
    %cst_163 = arith.constant dense<0.000000e+00> : vector<8x32xf32>
    %334 = tpu.matmul %332, %333, %cst_163 {dimension_numbers = #tpu.dot_dimension_numbers<[1], [0], [0], [1], [0, 0, 1, 1], [], []>} : vector<8x8xf32>, vector<8x32xf32>, vector<8x32xf32> -> vector<8x32xf32>
    %335 = arith.addf %303, %334 : vector<8x32xf32>
    %c1160 = arith.constant 1160 : index
    %c0_164 = arith.constant 0 : index
    %336 = vector.load %arg2[%c1160, %c0_164] : memref<1672x128xf32, #tpu.memory_space<vmem>>, vector<1x32xf32>
    %337 = vector.broadcast %336 : vector<1x32xf32> to vector<8x32xf32>
    %338 = arith.addf %335, %337 : vector<8x32xf32>
    %339 = arith.addf %206, %338 : vector<8x32xf32>
    %c1168 = arith.constant 1168 : index
    %c0_165 = arith.constant 0 : index
    %340 = vector.load %arg2[%c1168, %c0_165] : memref<1672x128xf32, #tpu.memory_space<vmem>>, vector<1x32xf32>
    %c1176 = arith.constant 1176 : index
    %c0_166 = arith.constant 0 : index
    %341 = vector.load %arg2[%c1176, %c0_166] : memref<1672x128xf32, #tpu.memory_space<vmem>>, vector<1x32xf32>
    %cst_167 = arith.constant dense<0.000000e+00> : vector<8xf32>
    %342 = vector.multi_reduction <add>, %339, %cst_167 [1] : vector<8x32xf32> to vector<8xf32>
    %343 = vector.shape_cast %342 : vector<8xf32> to vector<8x1xf32>
    %cst_168 = arith.constant 3.200000e+01 : f32
    %344 = vector.broadcast %cst_168 : f32 to vector<8x1xf32>
    %345 = arith.divf %343, %344 : vector<8x1xf32>
    %346 = vector.broadcast %345 : vector<8x1xf32> to vector<8x32xf32>
    %347 = arith.subf %339, %346 : vector<8x32xf32>
    %348 = arith.mulf %347, %347 : vector<8x32xf32>
    %cst_169 = arith.constant dense<0.000000e+00> : vector<8xf32>
    %349 = vector.multi_reduction <add>, %348, %cst_169 [1] : vector<8x32xf32> to vector<8xf32>
    %350 = vector.shape_cast %349 : vector<8xf32> to vector<8x1xf32>
    %cst_170 = arith.constant 3.200000e+01 : f32
    %351 = vector.broadcast %cst_170 : f32 to vector<8x1xf32>
    %352 = arith.divf %350, %351 : vector<8x1xf32>
    %cst_171 = arith.constant 9.99999974E-6 : f32
    %353 = vector.broadcast %cst_171 : f32 to vector<8x1xf32>
    %354 = arith.addf %352, %353 : vector<8x1xf32>
    %355 = math.rsqrt %354 : vector<8x1xf32>
    %356 = vector.broadcast %355 : vector<8x1xf32> to vector<8x32xf32>
    %357 = arith.mulf %347, %356 : vector<8x32xf32>
    %358 = vector.broadcast %340 : vector<1x32xf32> to vector<8x32xf32>
    %359 = arith.mulf %357, %358 : vector<8x32xf32>
    %360 = vector.broadcast %341 : vector<1x32xf32> to vector<8x32xf32>
    %361 = arith.addf %359, %360 : vector<8x32xf32>
    %c1184 = arith.constant 1184 : index
    %c0_172 = arith.constant 0 : index
    %362 = vector.load %arg2[%c1184, %c0_172] : memref<1672x128xf32, #tpu.memory_space<vmem>>, vector<32x128xf32>
    %cst_173 = arith.constant dense<0.000000e+00> : vector<8x128xf32>
    %363 = tpu.matmul %361, %362, %cst_173 {dimension_numbers = #tpu.dot_dimension_numbers<[1], [0], [0], [1], [0, 0, 1, 1], [], []>} : vector<8x32xf32>, vector<32x128xf32>, vector<8x128xf32> -> vector<8x128xf32>
    %c1216 = arith.constant 1216 : index
    %c0_174 = arith.constant 0 : index
    %364 = vector.load %arg2[%c1216, %c0_174] : memref<1672x128xf32, #tpu.memory_space<vmem>>, vector<1x128xf32>
    %365 = vector.broadcast %364 : vector<1x128xf32> to vector<8x128xf32>
    %366 = arith.addf %363, %365 : vector<8x128xf32>
    %cst_175 = arith.constant 0.000000e+00 : f32
    %367 = vector.broadcast %cst_175 : f32 to vector<8x128xf32>
    %368 = arith.maximumf %366, %367 : vector<8x128xf32>
    %c1224 = arith.constant 1224 : index
    %c0_176 = arith.constant 0 : index
    %369 = vector.load %arg2[%c1224, %c0_176] : memref<1672x128xf32, #tpu.memory_space<vmem>>, vector<128x32xf32>
    %cst_177 = arith.constant dense<0.000000e+00> : vector<8x32xf32>
    %370 = tpu.matmul %368, %369, %cst_177 {dimension_numbers = #tpu.dot_dimension_numbers<[1], [0], [0], [1], [0, 0, 1, 1], [], []>} : vector<8x128xf32>, vector<128x32xf32>, vector<8x32xf32> -> vector<8x32xf32>
    %c1352 = arith.constant 1352 : index
    %c0_178 = arith.constant 0 : index
    %371 = vector.load %arg2[%c1352, %c0_178] : memref<1672x128xf32, #tpu.memory_space<vmem>>, vector<1x32xf32>
    %372 = vector.broadcast %371 : vector<1x32xf32> to vector<8x32xf32>
    %373 = arith.addf %370, %372 : vector<8x32xf32>
    %374 = arith.addf %361, %373 : vector<8x32xf32>
    %c1360 = arith.constant 1360 : index
    %c0_179 = arith.constant 0 : index
    %375 = vector.load %arg2[%c1360, %c0_179] : memref<1672x128xf32, #tpu.memory_space<vmem>>, vector<1x32xf32>
    %c1368 = arith.constant 1368 : index
    %c0_180 = arith.constant 0 : index
    %376 = vector.load %arg2[%c1368, %c0_180] : memref<1672x128xf32, #tpu.memory_space<vmem>>, vector<1x32xf32>
    %cst_181 = arith.constant dense<0.000000e+00> : vector<8xf32>
    %377 = vector.multi_reduction <add>, %374, %cst_181 [1] : vector<8x32xf32> to vector<8xf32>
    %378 = vector.shape_cast %377 : vector<8xf32> to vector<8x1xf32>
    %cst_182 = arith.constant 3.200000e+01 : f32
    %379 = vector.broadcast %cst_182 : f32 to vector<8x1xf32>
    %380 = arith.divf %378, %379 : vector<8x1xf32>
    %381 = vector.broadcast %380 : vector<8x1xf32> to vector<8x32xf32>
    %382 = arith.subf %374, %381 : vector<8x32xf32>
    %383 = arith.mulf %382, %382 : vector<8x32xf32>
    %cst_183 = arith.constant dense<0.000000e+00> : vector<8xf32>
    %384 = vector.multi_reduction <add>, %383, %cst_183 [1] : vector<8x32xf32> to vector<8xf32>
    %385 = vector.shape_cast %384 : vector<8xf32> to vector<8x1xf32>
    %cst_184 = arith.constant 3.200000e+01 : f32
    %386 = vector.broadcast %cst_184 : f32 to vector<8x1xf32>
    %387 = arith.divf %385, %386 : vector<8x1xf32>
    %cst_185 = arith.constant 9.99999974E-6 : f32
    %388 = vector.broadcast %cst_185 : f32 to vector<8x1xf32>
    %389 = arith.addf %387, %388 : vector<8x1xf32>
    %390 = math.rsqrt %389 : vector<8x1xf32>
    %391 = vector.broadcast %390 : vector<8x1xf32> to vector<8x32xf32>
    %392 = arith.mulf %382, %391 : vector<8x32xf32>
    %393 = vector.broadcast %375 : vector<1x32xf32> to vector<8x32xf32>
    %394 = arith.mulf %392, %393 : vector<8x32xf32>
    %395 = vector.broadcast %376 : vector<1x32xf32> to vector<8x32xf32>
    %396 = arith.addf %394, %395 : vector<8x32xf32>
    %c0_186 = arith.constant 0 : index
    %c0_187 = arith.constant 0 : index
    %397 = vector.load %arg3[%c0_186, %c0_187] : memref<56x256xf32, #tpu.memory_space<vmem>>, vector<16x256xf32>
    %c16 = arith.constant 16 : index
    %c0_188 = arith.constant 0 : index
    %398 = vector.load %arg3[%c16, %c0_188] : memref<56x256xf32, #tpu.memory_space<vmem>>, vector<32x256xf32>
    %c48 = arith.constant 48 : index
    %c0_189 = arith.constant 0 : index
    %399 = vector.load %arg3[%c48, %c0_189] : memref<56x256xf32, #tpu.memory_space<vmem>>, vector<1x256xf32>
    %cst_190 = arith.constant dense<0.000000e+00> : vector<8x256xf32>
    %400 = tpu.matmul %16, %397, %cst_190 {dimension_numbers = #tpu.dot_dimension_numbers<[1], [0], [0], [1], [0, 0, 1, 1], [], []>} : vector<8x16xf32>, vector<16x256xf32>, vector<8x256xf32> -> vector<8x256xf32>
    %cst_191 = arith.constant dense<0.000000e+00> : vector<8x256xf32>
    %401 = tpu.matmul %396, %398, %cst_191 {dimension_numbers = #tpu.dot_dimension_numbers<[1], [0], [0], [1], [0, 0, 1, 1], [], []>} : vector<8x32xf32>, vector<32x256xf32>, vector<8x256xf32> -> vector<8x256xf32>
    %402 = arith.addf %400, %401 : vector<8x256xf32>
    %403 = vector.broadcast %399 : vector<1x256xf32> to vector<8x256xf32>
    %404 = arith.addf %402, %403 : vector<8x256xf32>
    %cst_192 = arith.constant 0.000000e+00 : f32
    %405 = vector.broadcast %cst_192 : f32 to vector<8x256xf32>
    %406 = arith.maximumf %404, %405 : vector<8x256xf32>
    %cst_193 = arith.constant dense<0.000000e+00> : vector<16xf32>
    %407 = vector.multi_reduction <add>, %16, %cst_193 [0] : vector<8x16xf32> to vector<16xf32>
    %408 = vector.shape_cast %407 : vector<16xf32> to vector<1x16xf32>
    %cst_194 = arith.constant 8.000000e+00 : f32
    %409 = vector.broadcast %cst_194 : f32 to vector<1x16xf32>
    %410 = arith.divf %408, %409 : vector<1x16xf32>
    %c1408 = arith.constant 1408 : index
    %c0_195 = arith.constant 0 : index
    %411 = vector.load %arg2[%c1408, %c0_195] : memref<1672x128xf32, #tpu.memory_space<vmem>>, vector<256x128xf32>
    %cst_196 = arith.constant dense<0.000000e+00> : vector<8x128xf32>
    %412 = tpu.matmul %406, %411, %cst_196 {dimension_numbers = #tpu.dot_dimension_numbers<[1], [0], [0], [1], [0, 0, 1, 1], [], []>} : vector<8x256xf32>, vector<256x128xf32>, vector<8x128xf32> -> vector<8x128xf32>
    %c1376 = arith.constant 1376 : index
    %c0_197 = arith.constant 0 : index
    %413 = vector.load %arg2[%c1376, %c0_197] : memref<1672x128xf32, #tpu.memory_space<vmem>>, vector<16x128xf32>
    %cst_198 = arith.constant dense<0.000000e+00> : vector<8x128xf32>
    %414 = tpu.matmul %16, %413, %cst_198 {dimension_numbers = #tpu.dot_dimension_numbers<[1], [0], [0], [1], [0, 0, 1, 1], [], []>} : vector<8x16xf32>, vector<16x128xf32>, vector<8x128xf32> -> vector<8x128xf32>
    %415 = arith.addf %412, %414 : vector<8x128xf32>
    %c1392 = arith.constant 1392 : index
    %c0_199 = arith.constant 0 : index
    %416 = vector.load %arg2[%c1392, %c0_199] : memref<1672x128xf32, #tpu.memory_space<vmem>>, vector<16x128xf32>
    %cst_200 = arith.constant dense<0.000000e+00> : vector<1x128xf32>
    %417 = tpu.matmul %410, %416, %cst_200 {dimension_numbers = #tpu.dot_dimension_numbers<[1], [0], [0], [1], [0, 0, 1, 1], [], []>} : vector<1x16xf32>, vector<16x128xf32>, vector<1x128xf32> -> vector<1x128xf32>
    %418 = vector.broadcast %417 : vector<1x128xf32> to vector<8x128xf32>
    %419 = arith.addf %415, %418 : vector<8x128xf32>
    %c1664 = arith.constant 1664 : index
    %c0_201 = arith.constant 0 : index
    %420 = vector.load %arg2[%c1664, %c0_201] : memref<1672x128xf32, #tpu.memory_space<vmem>>, vector<1x128xf32>
    %421 = vector.broadcast %420 : vector<1x128xf32> to vector<8x128xf32>
    %422 = arith.addf %419, %421 : vector<8x128xf32>
    %c0_202 = arith.constant 0 : index
    %c0_203 = arith.constant 0 : index
    %423 = vector.load %arg4[%c0_202, %c0_203] : memref<8x128xf32, #tpu.memory_space<vmem>>, vector<8x128xf32>
    tpu.vector_store %arg4[%c0_202, %c0_203], %422 {strides = array<i32>} : memref<8x128xf32, #tpu.memory_space<vmem>>, vector<8x128xf32>,
    return
  }
}

</mosaic_0001>

<bundles_post_ra>
// kernel: structrelnet_forward.1
= control target key start
LH: loop header
LB: loop body
LE: loop exit
PB: predicated region body
PF: predicated region fallthrough
CT: control target
= control target key end

     0   :  { %v5961_v0 = vmov 0.0   ;;  %vm5962_vm0 = vmmov 0   ;;  %vm23_vm1 = vcmask 261120   ;;  %vm102_vm2 = vcmask 64512   ;;  %s7159_s2 = inlined_call_operand.vmem [shape: f32[1672,128], index: 2, kind: input, shape index: {}]   ;;  %s7160_s0 = inlined_call_operand.vmem [shape: f32[8,32], index: 0, kind: input, shape index: {}]   ;;  %s7161_s1 = inlined_call_operand.vmem [shape: f32[8,8], index: 1, kind: input, shape index: {}]   ;;  %s7162_s3 = inlined_call_operand.vmem [shape: f32[56,256], index: 3, kind: input, shape index: {}]   ;;  %s7163_s4 = inlined_call_operand.vmem [shape: f32[8,128], index: 4, kind: output, shape index: {}]  }
   0x1   :  { %5401 = vmatprep.subr.mxu1 %v5961_v0  ;;  %v22_v1 = vld [vmem:[%s7159_s2 + $0x18] sm:$0xff]  ;;  %v21_v2 = vld [vmem:[%s7159_s2 + $0x10] sm:$0xff]  ;;  %5409 = vmatprep.mubr.msk.f32.mxu1 %vm5962_vm0, %v5961_v0  ;;  %v20_v3 = vld [vmem:[%s7159_s2 + $0x8] sm:$0xff]  ;;  %vm179_vm3 = vcmask 130048  }
   0x2   :  { %5402 = vmatpush3.msra.mxu1 %v22_v1  ;;  %5429 = vmatprep.subr.mxu0 %v5961_v0  ;;  %v19_v4 = vld [vmem:[%s7159_s2] sm:$0xff]  ;;  %v178_v9 = vld [vmem:[%s7159_s2 + $0x30] sm:$0xff]  ;;  %v177_v10 = vld [vmem:[%s7159_s2 + $0x28] sm:$0xff] }
   0x3   :  { %5403 = vmatprep.subr.mxu1 %v5961_v0  ;;  %5437 = vmatprep.mubr.msk.f32.mxu0 %vm5962_vm0, %v5961_v0  ;;  %v6011_v5 = vld [vmem:[%s7160_s0] sm:$0xff]  ;;  %v332_v16 = vld [vmem:[%s7159_s2 + $0x58] sm:$0xff]  ;;  %v331_v17 = vld [vmem:[%s7159_s2 + $0x50] sm:$0xff] }
   0x4   :  { %5404 = vmatpush3.msra.mxu1 %v21_v2  ;;  %v18_v6 = vld [vmem:[%s7161_s1] sm:$0xff]  ;;  %5430 = vmatpush3.msra.mxu0 %v332_v16  ;;  %v330_v18 = vld [vmem:[%s7159_s2 + $0x48] sm:$0xff]  ;;  %v336_v21 = vld [vmem:[%s7159_s2 + $0x78] sm:$0xff] }
   0x5   :  { %5405 = vmatprep.subr.mxu1 %v5961_v0  ;;  %v5029_v11 = vld [vmem:[%s7159_s2 + $0x20] ss:$0 sm:$0xff]  ;;  %5431 = vmatprep.subr.mxu0 %v5961_v0  ;;  %v335_v23 = vld [vmem:[%s7159_s2 + $0x70] sm:$0xff]  ;;  %v334_v24 = vld [vmem:[%s7159_s2 + $0x68] sm:$0xff] }
   0x6   :  { %5406 = vmatpush3.msra.mxu1 %v20_v3  ;;  %5432 = vmatpush3.msra.mxu0 %v331_v17  ;;  %v329_v19 = vld [vmem:[%s7159_s2 + $0x40] sm:$0xff]  ;;  %v5036_v30 = vld [vmem:[%s7159_s2 + $0x1c8] ss:$0 sm:$0xff]  ;;  %v340_v36 = vld [vmem:[%s7159_s2 + $0x98] sm:$0xff] }
   0x7   :  { %5407 = vmatprep.subr.mxu1 %v5961_v0  ;;  %5433 = vmatprep.subr.mxu0 %v5961_v0  ;;  %v333_v25 = vld [vmem:[%s7159_s2 + $0x60] sm:$0xff]  ;;  %v339_v37 = vld [vmem:[%s7159_s2 + $0x90] sm:$0xff]  ;;  %v338_v38 = vld [vmem:[%s7159_s2 + $0x88] sm:$0xff] }
   0x8   :  { %5408 = vmatpush3.msra.mxu1 %v19_v4  ;;  %5434 = vmatpush3.msra.mxu0 %v330_v18  ;;  %v5034_v31 = vld [vmem:[%s7159_s2 + $0x1c0] ss:$0 sm:$0xff]  ;;  %v5038_v49 = vld [vmem:[%s7159_s2 + $0x1d0] ss:$0 sm:$0xff]  ;;  %v731_v53 = vld [vmem:[%s7159_s2 + $0xb8] sm:$0xff] }
   0x9   :  { %5410 = vmatmul.mubr.msk.f32.vlgmr.msra.gmra.mxu1 %vm23_vm1, %v6011_v5  ;;  %5412 = vmatprep.subr.mxu1 %v5961_v0  ;;  %v337_v39 = vld [vmem:[%s7159_s2 + $0x80] sm:$0xff]  ;;  %v730_v54 = vld [vmem:[%s7159_s2 + $0xb0] sm:$0xff]  ;;  %v729_v55 = vld [vmem:[%s7159_s2 + $0xa8] sm:$0xff] }
   0xa   :  { %5414 = vmatprep.mubr.msk.f32.mxu1 %vm5962_vm0, %v5961_v0  ;;  %5435 = vmatprep.subr.mxu0 %v5961_v0  ;;  %v728_v56 = vld [vmem:[%s7159_s2 + $0xa0] sm:$0xff]  ;;  %v735_v60 = vld [vmem:[%s7159_s2 + $0xd8] sm:$0xff]  ;;  %v734_v61 = vld [vmem:[%s7159_s2 + $0xd0] sm:$0xff] }
   0xb   :  { %5436 = vmatpush3.msra.mxu0 %v329_v19  ;;  %v733_v62 = vld [vmem:[%s7159_s2 + $0xc8] sm:$0xff]  ;;  %v732_v63 = vld [vmem:[%s7159_s2 + $0xc0] sm:$0xff] }
   0xc   :  { %5438 = vmatmul.mubr.msk.f32.vlgmr.msra.gmra.mxu0 %vm23_vm1, %v6011_v5  ;;  %5451 = vmatprep.subr.mxu0 %v5961_v0  ;;  %v737_v16 = vld [vmem:[%s7159_s2 + $0xe8] sm:$0xff]  ;;  %v736_v17 = vld [vmem:[%s7159_s2 + $0xe0] sm:$0xff] }
   0xd   :  { %5459 = vmatprep.mubr.msk.f32.mxu0 %vm5962_vm0, %v5961_v0  ;;  %5452 = vmatpush3.msra.mxu0 %v340_v36  ;;  %v727_v36 = vld [vmem:[%s7159_s2 + $0x1d8] sm:$0xff] }
   0xe   :  { %5453 = vmatprep.subr.mxu0 %v5961_v0 }
   0xf   :  { %5454 = vmatpush3.msra.mxu0 %v339_v37  ;;  %v1280_v37 = vld [vmem:[%s7159_s2 + $0x138] sm:$0xff] }
  0x10   :  { %5455 = vmatprep.subr.mxu0 %v5961_v0 }
  0x11   :  { %5456 = vmatpush3.msra.mxu0 %v338_v38  ;;  %v1279_v38 = vld [vmem:[%s7159_s2 + $0x130] sm:$0xff] }
  0x12   :  { %5457 = vmatprep.subr.mxu0 %v5961_v0 }
  0x13   :  { %5458 = vmatpush3.msra.mxu0 %v337_v39  ;;  %v1278_v39 = vld [vmem:[%s7159_s2 + $0x128] sm:$0xff] }
  0x14   :  { %5460 = vmatmul.mubr.msk.f32.vlgmr.msra.gmra.mxu0 %vm23_vm1, %v6011_v5  ;;  %5472 = vmatprep.subr.mxu0 %v5961_v0 }
  0x15   :  { %5480 = vmatprep.mubr.msk.f32.mxu0 %vm5962_vm0, %v5961_v0  ;;  %5473 = vmatpush3.msra.mxu0 %v731_v53 }
  0x16   :  { %5474 = vmatprep.subr.mxu0 %v5961_v0 }
  0x17   :  { %5475 = vmatpush3.msra.mxu0 %v730_v54 }
  0x18   :  { %5476 = vmatprep.subr.mxu0 %v5961_v0 }
  0x19   :  { %5477 = vmatpush3.msra.mxu0 %v729_v55  ;;  %v5054_v55 = vld [vmem:[%s7159_s2 + $0x1c2] ss:$0 sm:$0xff] }
  0x1a   :  { %5478 = vmatprep.subr.mxu0 %v5961_v0 }
  0x1b   :  { %5479 = vmatpush3.msra.mxu0 %v728_v56 }
  0x1c   :  { %5481 = vmatmul.mubr.msk.f32.vlgmr.msra.gmra.mxu0 %vm23_vm1, %v6011_v5  ;;  %5494 = vmatprep.subr.mxu0 %v5961_v0 }
  0x1d   :  { %5502 = vmatprep.mubr.msk.f32.mxu0 %vm5962_vm0, %v5961_v0 }
  0xc9   :  { %v93_v7 = vpop.f32.mrf.mxu1 }
  0xca   :  { %5413 = vmatpush3.msra.mxu1 %v93_v7  ;;  %v5043_v7 = vld [vmem:[%s7159_s2 + $0x1c1] ss:$0 sm:$0xff] }
  0xcb   :  { %v5411_v8 = vpop.f32.mrf.mxu1  ;;  %5415 = vmatmul.mubr.msk.f32.vlgmr.msra.gmra.mxu1 %vm102_vm2, %v18_v6  ;;  %5417 = vmatprep.subr.mxu1 %v5961_v0 }
  0xcc   :  { %5421 = vmatprep.mubr.msk.f32.mxu1 %vm5962_vm0, %v5961_v0  ;;  %5418 = vmatpush3.msra.mxu1 %v178_v9  ;;  %v414_v26 = vpop.f32.mrf.mxu0 }
  0xcd   :  { %5419 = vmatprep.subr.mxu1 %v5961_v0  ;;  %v415_v35 = vadd.f32 %v5034_v31, %v414_v26 }
  0xce   :  { %5420 = vmatpush3.msra.mxu1 %v177_v10  ;;  %v5439_v27 = vpop.f32.mrf.mxu0 }
  0xcf   :  { %5424 = vmatprep.subr.mxu1 %v5961_v0  ;;  %v5047_v27 = vld [vmem:[%s7159_s2 + $0x1d1] ss:$0 sm:$0xff] }
  0xd4   :  { %v562_v50 = vpop.f32.mrf.mxu0 }
  0xd5   :  { %v563_v51 = vadd.f32 %v5038_v49, %v562_v50  ;;  %v5056_v49 = vld [vmem:[%s7159_s2 + $0x1ca] ss:$0 sm:$0xff] }
  0xd6   :  { %v5461_v52 = vpop.f32.mrf.mxu0 }
  0xdc   :  { %v813_v1 = vpop.f32.mrf.mxu0 }
  0xde   :  { %v5482_v2 = vpop.f32.mrf.mxu0 }
 0x18b   :  { %v172_v12 = vpop.f32.mrf.mxu1 }
 0x18c   :  { %v6037_v13 = vadd.f32 %v5029_v11, %v172_v12  ;;  %v814_v11 = vadd.f32 %v5043_v7, %v813_v1  ;;  %v739_v12 = vld [vmem:[%s7159_s2 + $0xf8] sm:$0xff] }
 0x18d   :  { %v5416_v14 = vpop.f32.mrf.mxu1  ;;  %5495 = vmatpush3.msra.mxu0 %v739_v12 }
 0x18e   :  { %v176_v15 = vmax.f32 %v6037_v13, 0.0  ;;  %v738_v14 = vld [vmem:[%s7159_s2 + $0xf0] sm:$0xff]  ;;  %5496 = vmatprep.subr.mxu0 %v5961_v0  ;;  %v4938_v13 = vld [vmem:[%s7159_s2 + $0x578] sm:$0xff] }
 0x18f   :  { %5497 = vmatpush3.msra.mxu0 %v738_v14 }
 0x190   :  { %5422 = vmatmul.mubr.msk.f32.vlgmr.msra.gmra.mxu1 %vm179_vm3, %v176_v15  ;;  %5498 = vmatprep.subr.mxu0 %v5961_v0 }
 0x191   :  { %5426 = vmatprep.mubr.msk.f32.mxu1 %vm5962_vm0, %v5961_v0  ;;  %5499 = vmatpush3.msra.mxu0 %v737_v16  ;;  %v1671_v16 = vld [vmem:[%s7159_s2 + $0x1e8] sm:$0xff] }
 0x192   :  { %5500 = vmatprep.subr.mxu0 %v5961_v0 }
 0x193   :  { %5501 = vmatpush3.msra.mxu0 %v736_v17 }
 0x194   :  { %5503 = vmatmul.mubr.msk.f32.vlgmr.msra.gmra.mxu0 %vm23_vm1, %v6011_v5  ;;  %5515 = vmatprep.subr.mxu0 %v5961_v0 }
 0x195   :  { %5517 = vmatprep.mubr.msk.f32.mxu0 %vm5962_vm0, %v5961_v0 }
 0x250   :  { %v249_v20 = vpop.f32.mrf.mxu1 }
 0x251   :  { %5425 = vmatpush3.msra.mxu1 %v249_v20 }
 0x252   :  { %v5423_v22 = vpop.f32.mrf.mxu1  ;;  %5427 = vmatmul.mubr.msk.f32.vlgmr.msra.gmra.mxu1 %vm102_vm2, %v18_v6  ;;  %5440 = vmatprep.subr.mxu1 %v5961_v0  ;;  %v5045_v6 = vld [vmem:[%s7159_s2 + $0x1c9] ss:$0 sm:$0xff] }
 0x253   :  { %5441 = vmatpush3.msra.mxu1 %v336_v21  ;;  %5448 = vmatprep.mubr.msk.f32.mxu1 %vm5962_vm0, %v5961_v0 }
 0x254   :  { %5442 = vmatprep.subr.mxu1 %v5961_v0 }
 0x255   :  { %5443 = vmatpush3.msra.mxu1 %v335_v23 }
 0x256   :  { %5444 = vmatprep.subr.mxu1 %v5961_v0 }
 0x257   :  { %5445 = vmatpush3.msra.mxu1 %v334_v24 }
 0x258   :  { %5446 = vmatprep.subr.mxu1 %v5961_v0 }
 0x259   :  { %5447 = vmatpush3.msra.mxu1 %v333_v25 }
 0x25a   :  { %5449 = vmatmul.mubr.msk.f32.vlgmr.msra.gmra.mxu1 %vm23_vm1, %v6011_v5  ;;  %5462 = vmatprep.subr.mxu1 %v5961_v0 }
 0x25b   :  { %5464 = vmatprep.mubr.msk.f32.mxu1 %vm5962_vm0, %v5961_v0 }
 0x312   :  { %v6089_v28 = vpop.f32.mrf.mxu1 }
 0x314   :  { %v5428_v29 = vpop.f32.mrf.mxu1 }
 0x315   :  { %v961_v29 = vpop.f32.mrf.mxu0 }
 0x317   :  { %v5504_v31 = vpop.f32.mrf.mxu0 }
 0x31a   :  { %v488_v32 = vpop.f32.mrf.mxu1 }
 0x31b   :  { %v489_v33 = vadd.f32 %v5036_v30, %v488_v32  ;;  %v962_v30 = vadd.f32 %v5047_v27, %v961_v29  ;;  %v1126_v32 = vld [vmem:[%s7159_s2 + $0x1e0] sm:$0xff]  ;;  %v1751_v29 = vld [vmem:[%s7159_s2 + $0x188] sm:$0xff] }
 0x31c   :  { %v5450_v34 = vpop.f32.mrf.mxu1  ;;  %5516 = vmatpush3.msra.mxu0 %v1126_v32 }
 0x31d   :  { %5463 = vmatpush3.xpose.msk.msra.mxu1 %vm102_vm2, %v489_v33  ;;  %5525 = vmatprep.subr.mxu0 %v5961_v0 }
 0x31e   :  { %5467 = vmatprep.subr.mxu1 %v5961_v0 }
 0x320   :  { %5465 = vmatmul.mubr.msk.f32.vlgmr.msra.gmra.mxu1 %vm102_vm2, %v415_v35 }
 0x321   :  { %5469 = vmatprep.mubr.msk.f32.mxu1 %vm5962_vm0, %v5961_v0  ;;  %5468 = vmatpush3.msra.mxu1 %v563_v51 }
 0x322   :  { %5483 = vmatprep.subr.mxu1 %v5961_v0 }
 0x3e0   :  { %v638_v40 = vpop.f32.mrf.mxu1 }
 0x3e1   :  { %v642_v41 = vmul.f32 0.35355338, %v638_v40  ;;  %v1277_v40 = vld [vmem:[%s7159_s2 + $0x120] sm:$0xff] }
 0x3e2   :  { %v5466_v42 = vpop.f32.mrf.mxu1 }
 0x3e3   :  { %v643_v43 = vsel %vm102_vm2, %v642_v41, -inf }
 0x3e4   :  { %644 = vmax.xlane.f32.xlu0 %v643_v43  ;;  %v1275_v43 = vld [vmem:[%s7159_s2 + $0x110] sm:$0xff] }
 0x46d   :  { %v645_v44 = vpop.xlane.xlu0 %644 }
 0x46e   :  { %v646_v45 = vsub.f32 %v642_v41, %v645_v44  ;;  %v1276_v41 = vld [vmem:[%s7159_s2 + $0x118] sm:$0xff] }
 0x470   :  { %v647_v46 = vmul.f32 1.442695, %v646_v45  ;;  %v1274_v45 = vld [vmem:[%s7159_s2 + $0x108] sm:$0xff] }
 0x472   :  { %5921 = vpow2.f32 %v647_v46 }
 0x47f   :  { %v5922_v47 = vpop.eup %5921 }
 0x480   :  { %v649_v48 = vsel %vm102_vm2, %v5922_v47, 0.0 }
 0x481   :  { %650 = vadd.xlane.f32.xlu0 %v649_v48 }
 0x50a   :  { %v651_v57 = vpop.xlane.xlu0 %650 }
 0x50b   :  { %5923 = vrcp.f32 %v651_v57 }
 0x518   :  { %v5924_v58 = vpop.eup %5923 }
 0x519   :  { %v653_v59 = vmul.f32 %v5924_v58, %v5922_v47  ;;  %v1273_v47 = vld [vmem:[%s7159_s2 + $0x100] sm:$0xff] }
 0x51b   :  { %5470 = vmatmul.mubr.msk.f32.vlgmr.msra.gmra.mxu1 %vm102_vm2, %v653_v59  ;;  %v1284_v59 = vld [vmem:[%s7159_s2 + $0x158] sm:$0xff] }
 0x51c   :  { %5484 = vmatpush3.msra.mxu1 %v735_v60  ;;  %5491 = vmatprep.mubr.msk.f32.mxu1 %vm5962_vm0, %v5961_v0  ;;  %v1283_v60 = vld [vmem:[%s7159_s2 + $0x150] sm:$0xff] }
 0x51d   :  { %5485 = vmatprep.subr.mxu1 %v5961_v0 }
 0x51e   :  { %5486 = vmatpush3.msra.mxu1 %v734_v61  ;;  %v1282_v61 = vld [vmem:[%s7159_s2 + $0x148] sm:$0xff] }
 0x51f   :  { %5487 = vmatprep.subr.mxu1 %v5961_v0 }
 0x520   :  { %5488 = vmatpush3.msra.mxu1 %v733_v62  ;;  %v1281_v62 = vld [vmem:[%s7159_s2 + $0x140] sm:$0xff] }
 0x521   :  { %5489 = vmatprep.subr.mxu1 %v5961_v0 }
 0x522   :  { %5490 = vmatpush3.msra.mxu1 %v732_v63 }
 0x523   :  { %5492 = vmatmul.mubr.msk.f32.vlgmr.msra.gmra.mxu1 %vm23_vm1, %v6011_v5  ;;  %5505 = vmatprep.subr.mxu1 %v5961_v0 }
 0x524   :  { %5507 = vmatprep.mubr.msk.f32.mxu1 %vm5962_vm0, %v5961_v0 }
 0x5db   :  { %v723_v3 = vpop.f32.mrf.mxu1 }
 0x5dd   :  { %v5471_v4 = vpop.f32.mrf.mxu1 }
 0x5e3   :  { %v887_v8 = vpop.f32.mrf.mxu1 }
 0x5e4   :  { %v888_v9 = vadd.f32 %v5045_v6, %v887_v8 }
 0x5e5   :  { %v5493_v10 = vpop.f32.mrf.mxu1 }
 0x5e6   :  { %5506 = vmatpush3.xpose.msk.msra.mxu1 %vm102_vm2, %v888_v9  ;;  %v5058_v10 = vld [vmem:[%s7159_s2 + $0x1d2] ss:$0 sm:$0xff] }
 0x5e7   :  { %5510 = vmatprep.subr.mxu1 %v5961_v0 }
 0x5e9   :  { %5508 = vmatmul.mubr.msk.f32.vlgmr.msra.gmra.mxu1 %vm102_vm2, %v814_v11 }
 0x5ea   :  { %5512 = vmatprep.mubr.msk.f32.mxu1 %vm5962_vm0, %v5961_v0  ;;  %5511 = vmatpush3.msra.mxu1 %v962_v30  ;;  %v1750_v30 = vld [vmem:[%s7159_s2 + $0x180] sm:$0xff] }
 0x5eb   :  { %5520 = vmatprep.subr.mxu1 %v5961_v0 }
 0x6a9   :  { %v1037_v18 = vpop.f32.mrf.mxu1 }
 0x6aa   :  { %v1041_v19 = vmul.f32 0.35355338, %v1037_v18 }
 0x6ab   :  { %v5509_v20 = vpop.f32.mrf.mxu1 }
 0x6ac   :  { %v1042_v21 = vsel %vm102_vm2, %v1041_v19, -inf  ;;  %v1749_v20 = vld [vmem:[%s7159_s2 + $0x178] sm:$0xff] }
 0x6ad   :  { %1043 = vmax.xlane.f32.xlu1 %v1042_v21  ;;  %v1748_v21 = vld [vmem:[%s7159_s2 + $0x170] sm:$0xff] }
 0x736   :  { %v1044_v22 = vpop.xlane.xlu1 %1043 }
 0x737   :  { %v1045_v23 = vsub.f32 %v1041_v19, %v1044_v22  ;;  %v1747_v22 = vld [vmem:[%s7159_s2 + $0x168] sm:$0xff] }
 0x739   :  { %v1046_v24 = vmul.f32 1.442695, %v1045_v23  ;;  %v1746_v23 = vld [vmem:[%s7159_s2 + $0x160] sm:$0xff] }
 0x73b   :  { %5925 = vpow2.f32 %v1046_v24  ;;  %v1753_v24 = vld [vmem:[%s7159_s2 + $0x198] sm:$0xff] }
 0x748   :  { %v5926_v25 = vpop.eup %5925 }
 0x749   :  { %v1048_v26 = vsel %vm102_vm2, %v5926_v25, 0.0 }
 0x74a   :  { %1049 = vadd.xlane.f32.xlu1 %v1048_v26  ;;  %v1752_v26 = vld [vmem:[%s7159_s2 + $0x190] sm:$0xff] }
 0x7d3   :  { %v1050_v33 = vpop.xlane.xlu1 %1049 }
 0x7d4   :  { %5927 = vrcp.f32 %v1050_v33 }
 0x7e1   :  { %v5928_v34 = vpop.eup %5927 }
 0x7e2   :  { %v1052_v35 = vmul.f32 %v5928_v34, %v5926_v25 }
 0x7e4   :  { %5513 = vmatmul.mubr.msk.f32.vlgmr.msra.gmra.mxu1 %vm102_vm2, %v1052_v35 }
 0x7e5   :  { %5521 = vmatpush3.msra.mxu1 %v727_v36  ;;  %5522 = vmatprep.mubr.msk.f32.mxu1 %vm5962_vm0, %v5961_v0 }
 0x7e6   :  { %5536 = vmatprep.subr.mxu1 %v5961_v0 }
 0x7e8   :  { %5523 = vmatmul.mubr.msk.f32.vlgmr.msra.gmra.mxu1 %vm102_vm2, %v723_v3 }
 0x7e9   :  { %5537 = vmatpush3.msra.mxu1 %v1280_v37  ;;  %5544 = vmatprep.mubr.msk.f32.mxu1 %vm5962_vm0, %v5961_v0  ;;  %v5066_v37 = vld [vmem:[%s7159_s2 + $0x1cb] ss:$0 sm:$0xff] }
 0x7ea   :  { %5538 = vmatprep.subr.mxu1 %v5961_v0 }
 0x7eb   :  { %5539 = vmatpush3.msra.mxu1 %v1279_v38  ;;  %v5064_v38 = vld [vmem:[%s7159_s2 + $0x1c3] ss:$0 sm:$0xff] }
 0x7ec   :  { %5540 = vmatprep.subr.mxu1 %v5961_v0 }
 0x7ed   :  { %5541 = vmatpush3.msra.mxu1 %v1278_v39 }
 0x7ee   :  { %5542 = vmatprep.subr.mxu1 %v5961_v0 }
 0x7ef   :  { %5543 = vmatpush3.msra.mxu1 %v1277_v40 }
 0x7f0   :  { %5545 = vmatmul.mubr.msk.f32.vlgmr.msra.gmra.mxu1 %vm23_vm1, %v6011_v5  ;;  %5558 = vmatprep.subr.mxu1 %v5961_v0 }
 0x7f1   :  { %5560 = vmatprep.mubr.msk.f32.mxu1 %vm5962_vm0, %v5961_v0 }
 0x8a4   :  { %v1122_v42 = vpop.f32.mrf.mxu1 }
 0x8a5   :  { %5518 = vmatmul.mubr.msk.f32.vlgmr.msra.gmra.mxu0 %vm102_vm2, %v1122_v42 }
 0x8a6   :  { %5526 = vmatpush3.msra.mxu0 %v1276_v41  ;;  %v5514_v44 = vpop.f32.mrf.mxu1  ;;  %5533 = vmatprep.mubr.msk.f32.mxu0 %vm5962_vm0, %v5961_v0 }
 0x8a7   :  { %5527 = vmatprep.subr.mxu0 %v5961_v0  ;;  %v1756_v44 = vld [vmem:[%s7159_s2 + $0x1b0] sm:$0xff] }
 0x8a8   :  { %5528 = vmatpush3.msra.mxu0 %v1275_v43  ;;  %v6255_v46 = vpop.f32.mrf.mxu1  ;;  %v1757_v43 = vld [vmem:[%s7159_s2 + $0x1b8] sm:$0xff] }
 0x8a9   :  { %5529 = vmatprep.subr.mxu0 %v5961_v0 }
 0x8aa   :  { %5530 = vmatpush3.msra.mxu0 %v1274_v45  ;;  %v5524_v48 = vpop.f32.mrf.mxu1  ;;  %v1755_v45 = vld [vmem:[%s7159_s2 + $0x1a8] sm:$0xff] }
 0x8ab   :  { %5531 = vmatprep.subr.mxu0 %v5961_v0 }
 0x8ac   :  { %5532 = vmatpush3.msra.mxu0 %v1273_v47 }
 0x8ad   :  { %5534 = vmatmul.mubr.msk.f32.vlgmr.msra.gmra.mxu0 %vm23_vm1, %v6011_v5  ;;  %5547 = vmatprep.subr.mxu0 %v5961_v0 }
 0x8ae   :  { %5555 = vmatprep.mubr.msk.f32.mxu0 %vm5962_vm0, %v5961_v0  ;;  %5548 = vmatpush3.msra.mxu0 %v1284_v59 }
 0x8af   :  { %5549 = vmatprep.subr.mxu0 %v5961_v0 }
 0x8b0   :  { %v1432_v50 = vpop.f32.mrf.mxu1  ;;  %5550 = vmatpush3.msra.mxu0 %v1283_v60 }
 0x8b1   :  { %v1433_v51 = vadd.f32 %v5056_v49, %v1432_v50  ;;  %5551 = vmatprep.subr.mxu0 %v5961_v0 }
 0x8b2   :  { %v5546_v52 = vpop.f32.mrf.mxu1  ;;  %5552 = vmatpush3.msra.mxu0 %v1282_v61 }
 0x8b3   :  { %5559 = vmatpush3.xpose.msk.msra.mxu1 %vm102_vm2, %v1433_v51  ;;  %5553 = vmatprep.subr.mxu0 %v5961_v0 }
 0x8b4   :  { %5563 = vmatprep.subr.mxu1 %v5961_v0  ;;  %5554 = vmatpush3.msra.mxu0 %v1281_v62 }
 0x8b5   :  { %5556 = vmatmul.mubr.msk.f32.vlgmr.msra.gmra.mxu0 %vm23_vm1, %v6011_v5  ;;  %5568 = vmatprep.subr.mxu0 %v5961_v0 }
 0x8b6   :  { %5570 = vmatprep.mubr.msk.f32.mxu0 %vm5962_vm0, %v5961_v0  ;;  %5569 = vmatpush3.msra.mxu0 %v1671_v16 }
 0x8b7   :  { %5584 = vmatprep.subr.mxu0 %v5961_v0 }
 0x965   :  { %v6272_v53 = vpop.f32.mrf.mxu0 }
 0x966   :  { %v1270_v33 = vadd.f32 %v6255_v46, %v6272_v53  ;;  %v1754_v46 = vld [vmem:[%s7159_s2 + $0x1a0] sm:$0xff] }
 0x967   :  { %v5519_v54 = vpop.f32.mrf.mxu0 }
 0x96d   :  { %v1358_v56 = vpop.f32.mrf.mxu0 }
 0x96e   :  { %v1359_v57 = vadd.f32 %v5054_v55, %v1358_v56  ;;  %v5068_v56 = vld [vmem:[%s7159_s2 + $0x1d3] ss:$0 sm:$0xff] }
 0x96f   :  { %v5535_v58 = vpop.f32.mrf.mxu0 }
 0x970   :  { %5561 = vmatmul.mubr.msk.f32.vlgmr.msra.gmra.mxu1 %vm102_vm2, %v1359_v57 }
 0x971   :  { %5565 = vmatprep.mubr.msk.f32.mxu1 %vm5962_vm0, %v5961_v0 }
 0x975   :  { %v1506_v11 = vpop.f32.mrf.mxu0 }
 0x976   :  { %v1507_v12 = vadd.f32 %v5058_v10, %v1506_v11 }
 0x977   :  { %v5557_v14 = vpop.f32.mrf.mxu0 }
 0x978   :  { %5564 = vmatpush3.msra.mxu1 %v1507_v12 }
 0x979   :  { %5573 = vmatprep.subr.mxu1 %v5961_v0 }
 0xa30   :  { %v1582_v63 = vpop.f32.mrf.mxu1 }
 0xa31   :  { %v1586_v1 = vmul.f32 0.35355338, %v1582_v63  ;;  %v2144_v63 = vld [vmem:[%s7159_s2 + $0x1f0] sm:$0xff] }
 0xa32   :  { %v5562_v2 = vpop.f32.mrf.mxu1 }
 0xa33   :  { %v1587_v3 = vsel %vm102_vm2, %v1586_v1, -inf }
 0xa34   :  { %1588 = vmax.xlane.f32.xlu0 %v1587_v3 }
 0xabd   :  { %v1589_v4 = vpop.xlane.xlu0 %1588 }
 0xabe   :  { %v1590_v6 = vsub.f32 %v1586_v1, %v1589_v4  ;;  %v5074_v4 = vld [vmem:[%s7159_s2 + $0x1f8] ss:$0 sm:$0xff] }
 0xac0   :  { %v1591_v7 = vmul.f32 1.442695, %v1590_v6 }
 0xac2   :  { %5929 = vpow2.f32 %v1591_v7 }
 0xacf   :  { %v5930_v8 = vpop.eup %5929 }
 0xad0   :  { %v1593_v9 = vsel %vm102_vm2, %v5930_v8, 0.0 }
 0xad1   :  { %1594 = vadd.xlane.f32.xlu1 %v1593_v9 }
 0xb5a   :  { %v1595_v17 = vpop.xlane.xlu1 %1594 }
 0xb5b   :  { %5931 = vrcp.f32 %v1595_v17 }
 0xb68   :  { %v5932_v18 = vpop.eup %5931 }
 0xb69   :  { %v1597_v19 = vmul.f32 %v5932_v18, %v5930_v8  ;;  %v2255_v18 = vld [vmem:[%s7159_s2 + $0x228] sm:$0xff] }
 0xb6b   :  { %5566 = vmatmul.mubr.msk.f32.vlgmr.msra.gmra.mxu1 %vm102_vm2, %v1597_v19  ;;  %v2253_v19 = vld [vmem:[%s7159_s2 + $0x218] sm:$0xff] }
 0xb6c   :  { %5581 = vmatprep.mubr.msk.f32.mxu1 %vm5962_vm0, %v5961_v0  ;;  %5574 = vmatpush3.msra.mxu1 %v1749_v20  ;;  %v2252_v20 = vld [vmem:[%s7159_s2 + $0x210] sm:$0xff] }
 0xb6d   :  { %5575 = vmatprep.subr.mxu1 %v5961_v0 }
 0xb6e   :  { %5576 = vmatpush3.msra.mxu1 %v1748_v21  ;;  %v2350_v21 = vld [vmem:[%s7159_s2 + $0x2b0] sm:$0xff] }
 0xb6f   :  { %5577 = vmatprep.subr.mxu1 %v5961_v0 }
 0xb70   :  { %5578 = vmatpush3.msra.mxu1 %v1747_v22  ;;  %v2349_v22 = vld [vmem:[%s7159_s2 + $0x2a8] sm:$0xff] }
 0xb71   :  { %5579 = vmatprep.subr.mxu1 %v5961_v0 }
 0xb72   :  { %5580 = vmatpush3.msra.mxu1 %v1746_v23  ;;  %v2348_v23 = vld [vmem:[%s7159_s2 + $0x2a0] sm:$0xff] }
 0xb73   :  { %5582 = vmatmul.mubr.msk.f32.vlgmr.msra.gmra.mxu1 %vm23_vm1, %v6011_v5  ;;  %5595 = vmatprep.subr.mxu1 %v5961_v0 }
 0xb74   :  { %5603 = vmatprep.mubr.msk.f32.mxu1 %vm5962_vm0, %v5961_v0  ;;  %5596 = vmatpush3.msra.mxu1 %v1757_v43 }
 0xb75   :  { %5597 = vmatprep.subr.mxu1 %v5961_v0 }
 0xb76   :  { %5598 = vmatpush3.msra.mxu1 %v1756_v44  ;;  %v2337_v44 = vld [vmem:[%s7159_s2 + $0x248] sm:$0xff] }
 0xb77   :  { %5599 = vmatprep.subr.mxu1 %v5961_v0 }
 0xb78   :  { %5600 = vmatpush3.msra.mxu1 %v1755_v45  ;;  %v2336_v45 = vld [vmem:[%s7159_s2 + $0x240] sm:$0xff] }
 0xb79   :  { %5601 = vmatprep.subr.mxu1 %v5961_v0 }
 0xb7a   :  { %5602 = vmatpush3.msra.mxu1 %v1754_v46  ;;  %v2335_v46 = vld [vmem:[%s7159_s2 + $0x238] sm:$0xff] }
 0xb7b   :  { %5604 = vmatmul.mubr.msk.f32.vlgmr.msra.gmra.mxu1 %vm23_vm1, %v6011_v5  ;;  %5616 = vmatprep.subr.mxu1 %v5961_v0 }
 0xb7c   :  { %5618 = vmatprep.mubr.msk.f32.mxu1 %vm5962_vm0, %v5961_v0  ;;  %5617 = vmatpush3.msra.mxu1 %v2144_v63  ;;  %v2455_v63 = vld [vmem:[%s7159_s2 + $0x2e8] sm:$0xff] }
 0xb7d   :  { %5632 = vmatprep.subr.mxu1 %v5961_v0 }
 0xc2b   :  { %v1667_v25 = vpop.f32.mrf.mxu1 }
 0xc2c   :  { %5571 = vmatmul.mubr.msk.f32.vlgmr.msra.gmra.mxu0 %vm102_vm2, %v1667_v25  ;;  %v2346_v25 = vld [vmem:[%s7159_s2 + $0x290] sm:$0xff] }
 0xc2d   :  { %5585 = vmatpush3.msra.mxu0 %v1753_v24  ;;  %v5567_v27 = vpop.f32.mrf.mxu1  ;;  %5592 = vmatprep.mubr.msk.f32.mxu0 %vm5962_vm0, %v5961_v0  ;;  %v2347_v24 = vld [vmem:[%s7159_s2 + $0x298] sm:$0xff] }
 0xc2e   :  { %5586 = vmatprep.subr.mxu0 %v5961_v0  ;;  %v2344_v27 = vld [vmem:[%s7159_s2 + $0x280] sm:$0xff] }
 0xc2f   :  { %5587 = vmatpush3.msra.mxu0 %v1752_v26  ;;  %v2345_v26 = vld [vmem:[%s7159_s2 + $0x288] sm:$0xff] }
 0xc30   :  { %5588 = vmatprep.subr.mxu0 %v5961_v0 }
 0xc31   :  { %5589 = vmatpush3.msra.mxu0 %v1751_v29  ;;  %v2343_v29 = vld [vmem:[%s7159_s2 + $0x278] sm:$0xff] }
 0xc32   :  { %5590 = vmatprep.subr.mxu0 %v5961_v0 }
 0xc33   :  { %5591 = vmatpush3.msra.mxu0 %v1750_v30  ;;  %v1831_v31 = vpop.f32.mrf.mxu1  ;;  %v2342_v30 = vld [vmem:[%s7159_s2 + $0x270] sm:$0xff] }
 0xc34   :  { %5593 = vmatmul.mubr.msk.f32.vlgmr.msra.gmra.mxu0 %vm23_vm1, %v6011_v5  ;;  %5606 = vmatprep.subr.mxu0 %v5961_v0  ;;  %v1832_v42 = vadd.f32 %v5064_v38, %v1831_v31  ;;  %v2341_v31 = vld [vmem:[%s7159_s2 + $0x268] sm:$0xff] }
 0xc35   :  { %5608 = vmatprep.mubr.msk.f32.mxu0 %vm5962_vm0, %v5961_v0  ;;  %v5583_v32 = vpop.f32.mrf.mxu1 }
 0xc36   :  { %v2340_v32 = vld [vmem:[%s7159_s2 + $0x260] sm:$0xff] }
 0xc3b   :  { %v1979_v57 = vpop.f32.mrf.mxu1 }
 0xc3c   :  { %v1980_v58 = vadd.f32 %v5068_v56, %v1979_v57 }
 0xc3d   :  { %v5605_v59 = vpop.f32.mrf.mxu1 }
 0xcec   :  { %v1741_v34 = vpop.f32.mrf.mxu0 }
 0xced   :  { %v1745_v35 = vadd.f32 %v1741_v34, %v1270_v33  ;;  %v2339_v33 = vld [vmem:[%s7159_s2 + $0x258] sm:$0xff]  ;;  %v2338_v34 = vld [vmem:[%s7159_s2 + $0x250] sm:$0xff] }
 0xcee   :  { %v5572_v36 = vpop.f32.mrf.mxu0 }
 0xcf4   :  { %v1905_v39 = vpop.f32.mrf.mxu0 }
 0xcf5   :  { %v1906_v40 = vadd.f32 %v5066_v37, %v1905_v39  ;;  %v5075_v39 = vld [vmem:[%s7159_s2 + $0x200] ss:$0 sm:$0xff] }
 0xcf6   :  { %v5594_v41 = vpop.f32.mrf.mxu0 }
 0xcf7   :  { %5607 = vmatpush3.xpose.msk.msra.mxu0 %vm102_vm2, %v1906_v40  ;;  %v5076_v41 = vld [vmem:[%s7159_s2 + $0x208] ss:$0 sm:$0xff] }
 0xcf8   :  { %5611 = vmatprep.subr.mxu0 %v5961_v0 }
 0xcfa   :  { %5609 = vmatmul.mubr.msk.f32.vlgmr.msra.gmra.mxu0 %vm102_vm2, %v1832_v42 }
 0xcfb   :  { %5613 = vmatprep.mubr.msk.f32.mxu0 %vm5962_vm0, %v5961_v0  ;;  %5612 = vmatpush3.msra.mxu0 %v1980_v58 }
 0xcfc   :  { %5621 = vmatprep.subr.mxu0 %v5961_v0 }
 0xdba   :  { %v2055_v47 = vpop.f32.mrf.mxu0 }
 0xdbb   :  { %v2059_v48 = vmul.f32 0.35355338, %v2055_v47  ;;  %v5077_v47 = vld [vmem:[%s7159_s2 + $0x230] ss:$0 sm:$0xff] }
 0xdbc   :  { %v5610_v49 = vpop.f32.mrf.mxu0 }
 0xdbd   :  { %v2060_v50 = vsel %vm102_vm2, %v2059_v48, -inf }
 0xdbe   :  { %2061 = vmax.xlane.f32.xlu0 %v2060_v50 }
 0xe47   :  { %v2062_v51 = vpop.xlane.xlu0 %2061 }
 0xe48   :  { %v2063_v52 = vsub.f32 %v2059_v48, %v2062_v51 }
 0xe4a   :  { %v2064_v53 = vmul.f32 1.442695, %v2063_v52  ;;  %v5079_v52 = vld [vmem:[%s7159_s2 + $0x2b8] ss:$0 sm:$0xff] }
 0xe4c   :  { %5933 = vpow2.f32 %v2064_v53 }
 0xe59   :  { %v5934_v54 = vpop.eup %5933 }
 0xe5a   :  { %v2066_v55 = vsel %vm102_vm2, %v5934_v54, 0.0 }
 0xe5b   :  { %2067 = vadd.xlane.f32.xlu1 %v2066_v55 }
 0xee4   :  { %v2068_v60 = vpop.xlane.xlu1 %2067 }
 0xee5   :  { %5935 = vrcp.f32 %v2068_v60 }
 0xef2   :  { %v5936_v61 = vpop.eup %5935 }
 0xef3   :  { %v2070_v62 = vmul.f32 %v5936_v61, %v5934_v54 }
 0xef5   :  { %5614 = vmatmul.mubr.msk.f32.vlgmr.msra.gmra.mxu0 %vm102_vm2, %v2070_v62 }
 0xef6   :  { %5629 = vmatprep.mubr.msk.f32.mxu0 %vm5962_vm0, %v5961_v0  ;;  %5622 = vmatpush3.msra.mxu0 %v2255_v18  ;;  %v2457_v18 = vld [vmem:[%s7159_s2 + $0x2f8] sm:$0xff] }
 0xef7   :  { %5623 = vmatprep.subr.mxu0 %v5961_v0 }
 0xfb5   :  { %v2140_v1 = vpop.f32.mrf.mxu0 }
 0xfb6   :  { %5619 = vmatmul.mubr.msk.f32.vlgmr.msra.gmra.mxu1 %vm102_vm2, %v2140_v1  ;;  %v2454_v1 = vld [vmem:[%s7159_s2 + $0x2e0] sm:$0xff] }
 0xfb7   :  { %v5615_v2 = vpop.f32.mrf.mxu0  ;;  %5664 = vmatprep.mubr.msk.f32.mxu1 %vm5962_vm0, %v5961_v0  ;;  %5633 = vmatpush3.msra.mxu1 %v2350_v21  ;;  %v2461_v21 = vld [vmem:[%s7159_s2 + $0x318] sm:$0xff] }
 0xfb8   :  { %5634 = vmatprep.subr.mxu1 %v5961_v0  ;;  %v2453_v2 = vld [vmem:[%s7159_s2 + $0x2d8] sm:$0xff] }
 0xfb9   :  { %5635 = vmatpush3.msra.mxu1 %v2349_v22  ;;  %v2460_v22 = vld [vmem:[%s7159_s2 + $0x310] sm:$0xff] }
 0xfba   :  { %5636 = vmatprep.subr.mxu1 %v5961_v0 }
 0xfbb   :  { %5637 = vmatpush3.msra.mxu1 %v2348_v23 }
 0xfbc   :  { %5638 = vmatprep.subr.mxu1 %v5961_v0 }
 0xfbd   :  { %5639 = vmatpush3.msra.mxu1 %v2347_v24 }
 0xfbe   :  { %5640 = vmatprep.subr.mxu1 %v5961_v0 }
 0xfbf   :  { %5641 = vmatpush3.msra.mxu1 %v2346_v25  ;;  %v5084_v25 = vld [vmem:[%s7159_s2 + $0x458] ss:$0 sm:$0xff] }
 0xfc0   :  { %5642 = vmatprep.subr.mxu1 %v5961_v0 }
 0xfc1   :  { %5643 = vmatpush3.msra.mxu1 %v2345_v26 }
 0xfc2   :  { %5644 = vmatprep.subr.mxu1 %v5961_v0 }
 0xfc3   :  { %5645 = vmatpush3.msra.mxu1 %v2344_v27  ;;  %v5082_v27 = vld [vmem:[%s7159_s2 + $0x450] ss:$0 sm:$0xff] }
 0xfc4   :  { %5646 = vmatprep.subr.mxu1 %v5961_v0 }
 0xfc5   :  { %5647 = vmatpush3.msra.mxu1 %v2343_v29 }
 0xfc6   :  { %5648 = vmatprep.subr.mxu1 %v5961_v0 }
 0xfc7   :  { %5649 = vmatpush3.msra.mxu1 %v2342_v30 }
 0xfc8   :  { %5650 = vmatprep.subr.mxu1 %v5961_v0 }
 0xfc9   :  { %5651 = vmatpush3.msra.mxu1 %v2341_v31 }
 0xfca   :  { %5652 = vmatprep.subr.mxu1 %v5961_v0 }
 0xfcb   :  { %5653 = vmatpush3.msra.mxu1 %v2340_v32  ;;  %v2857_v32 = vld [vmem:[%s7159_s2 + $0x348] sm:$0xff] }
 0xfcc   :  { %5654 = vmatprep.subr.mxu1 %v5961_v0 }
 0xfcd   :  { %5655 = vmatpush3.msra.mxu1 %v2339_v33  ;;  %v5086_v33 = vld [vmem:[%s7159_s2 + $0x460] ss:$0 sm:$0xff] }
 0xfce   :  { %5656 = vmatprep.subr.mxu1 %v5961_v0 }
 0xfcf   :  { %5657 = vmatpush3.msra.mxu1 %v2338_v34  ;;  %v2856_v34 = vld [vmem:[%s7159_s2 + $0x340] sm:$0xff] }
 0xfd0   :  { %5658 = vmatprep.subr.mxu1 %v5961_v0 }
 0xfd1   :  { %5659 = vmatpush3.msra.mxu1 %v2337_v44 }
 0xfd2   :  { %5660 = vmatprep.subr.mxu1 %v5961_v0 }
 0xfd3   :  { %5661 = vmatpush3.msra.mxu1 %v2336_v45 }
 0xfd4   :  { %5662 = vmatprep.subr.mxu1 %v5961_v0 }
 0xfd5   :  { %5663 = vmatpush3.msra.mxu1 %v2335_v46 }
 0xfd6   :  { %5705 = vmatprep.subr.mxu1 %v5961_v0 }
0x1076   :  { %v2214_v3 = vpop.f32.mrf.mxu1 }
0x1077   :  { %v2218_v6 = vadd.f32 %v2214_v3, %v1745_v35  ;;  %v2452_v3 = vld [vmem:[%s7159_s2 + $0x2d0] sm:$0xff] }
0x1078   :  { %v5620_v7 = vpop.f32.mrf.mxu1 }
0x1079   :  { %v2224_v8 = vadd.f32 %v5074_v4, %v2218_v6 }
0x107b   :  { %v2225_v9 = vadd.f32 %v2224_v8, %v6011_v5  ;;  %v2254_v5 = vld [vmem:[%s7159_s2 + $0x220] sm:$0xff] }
0x107c   :  { %5624 = vmatpush3.msra.mxu0 %v2254_v5  ;;  %v2456_v5 = vld [vmem:[%s7159_s2 + $0x2f0] sm:$0xff] }
0x107d   :  { %v2228_v10 = vsel %vm23_vm1, %v2225_v9, 0.0  ;;  %5625 = vmatprep.subr.mxu0 %v5961_v0 }
0x107e   :  { %2229 = vadd.xlane.f32.xlu0 %v2228_v10  ;;  %5626 = vmatpush3.msra.mxu0 %v2253_v19  ;;  %v2463_v19 = vld [vmem:[%s7159_s2 + $0x328] sm:$0xff] }
0x107f   :  { %5627 = vmatprep.subr.mxu0 %v5961_v0 }
0x1080   :  { %5628 = vmatpush3.msra.mxu0 %v2252_v20  ;;  %v2462_v20 = vld [vmem:[%s7159_s2 + $0x320] sm:$0xff] }
0x1081   :  { %5667 = vmatprep.subr.mxu0 %v5961_v0 }
0x1107   :  { %v2230_v11 = vpop.xlane.xlu0 %2229 }
0x1108   :  { %v2232_v12 = vmul.f32 0.03125, %v2230_v11  ;;  %v5081_v11 = vld [vmem:[%s7159_s2 + $0x2c8] ss:$0 sm:$0xff] }
0x110a   :  { %v2233_v14 = vsub.f32 %v2225_v9, %v2232_v12  ;;  %v5080_v9 = vld [vmem:[%s7159_s2 + $0x2c0] ss:$0 sm:$0xff] }
0x110c   :  { %v2234_v16 = vmul.f32 %v2233_v14, %v2233_v14 }
0x110e   :  { %v2235_v17 = vsel %vm23_vm1, %v2234_v16, 0.0  ;;  %v2459_v16 = vld [vmem:[%s7159_s2 + $0x308] sm:$0xff] }
0x110f   :  { %2236 = vadd.xlane.f32.xlu1 %v2235_v17  ;;  %v2458_v17 = vld [vmem:[%s7159_s2 + $0x300] sm:$0xff] }
0x1198   :  { %v2237_v35 = vpop.xlane.xlu1 %2236 }
0x1199   :  { %v2238_v36 = vmul.f32 0.03125, %v2237_v35 }
0x119b   :  { %v2239_v37 = vadd.f32 1e-05, %v2238_v36  ;;  %v2855_v36 = vld [vmem:[%s7159_s2 + $0x338] sm:$0xff] }
0x119d   :  { %5937 = vrsqrt.f32 %v2239_v37 }
0x11aa   :  { %v5938_v38 = vpop.eup %5937 }
0x11ab   :  { %v2241_v40 = vmul.f32 %v5938_v38, %v2233_v14 }
0x11ad   :  { %v2246_v42 = vmul.f32 %v5075_v39, %v2241_v40  ;;  %v2854_v39 = vld [vmem:[%s7159_s2 + $0x330] sm:$0xff]  ;;  %v2865_v40 = vld [vmem:[%s7159_s2 + $0x388] sm:$0xff] }
0x11af   :  { %v2251_v43 = vadd.f32 %v5076_v41, %v2246_v42  ;;  %v2864_v41 = vld [vmem:[%s7159_s2 + $0x380] sm:$0xff]  ;;  %v2863_v42 = vld [vmem:[%s7159_s2 + $0x378] sm:$0xff] }
0x11b1   :  { %5630 = vmatmul.mubr.msk.f32.vlgmr.msra.gmra.mxu0 %vm23_vm1, %v2251_v43 }
0x11b2   :  { %5675 = vmatprep.mubr.msk.f32.mxu0 %vm5962_vm0, %v5961_v0  ;;  %5668 = vmatpush3.msra.mxu0 %v2455_v63  ;;  %v2858_v63 = vld [vmem:[%s7159_s2 + $0x350] sm:$0xff] }
0x11b3   :  { %5669 = vmatprep.subr.mxu0 %v5961_v0 }
0x11b4   :  { %5670 = vmatpush3.msra.mxu0 %v2454_v1 }
0x11b5   :  { %5671 = vmatprep.subr.mxu0 %v5961_v0 }
0x11b6   :  { %5672 = vmatpush3.msra.mxu0 %v2453_v2 }
0x11b7   :  { %5673 = vmatprep.subr.mxu0 %v5961_v0 }
0x11b8   :  { %5674 = vmatpush3.msra.mxu0 %v2452_v3  ;;  %v5093_v3 = vld [vmem:[%s7159_s2 + $0x459] ss:$0 sm:$0xff] }
0x11b9   :  { %5678 = vmatprep.subr.mxu0 %v5961_v0 }
0x1271   :  { %v2330_v48 = vpop.f32.mrf.mxu0 }
0x1272   :  { %v2331_v49 = vadd.f32 %v5077_v47, %v2330_v48 }
0x1273   :  { %v5631_v50 = vpop.f32.mrf.mxu0 }
0x1274   :  { %v2334_v51 = vmax.f32 %v2331_v49, 0.0 }
0x1276   :  { %5665 = vmatmul.mubr.f32.vlgmr.msra.gmra.mxu1 %v2334_v51 }
0x1277   :  { %5707 = vmatprep.mubr.msk.f32.mxu1 %vm5962_vm0, %v5961_v0 }
0x1336   :  { %v2422_v53 = vpop.f32.mrf.mxu1 }
0x1337   :  { %v2423_v54 = vadd.f32 %v5079_v52, %v2422_v53 }
0x1338   :  { %v5666_v55 = vpop.f32.mrf.mxu1 }
0x1339   :  { %v2426_v56 = vadd.f32 %v2423_v54, %v2251_v43  ;;  %v2862_v43 = vld [vmem:[%s7159_s2 + $0x370] sm:$0xff] }
0x133b   :  { %v2429_v57 = vsel %vm23_vm1, %v2426_v56, 0.0 }
0x133c   :  { %2430 = vadd.xlane.f32.xlu0 %v2429_v57 }
0x13c5   :  { %v2431_v58 = vpop.xlane.xlu0 %2430 }
0x13c6   :  { %v2432_v59 = vmul.f32 0.03125, %v2431_v58 }
0x13c8   :  { %v2433_v60 = vsub.f32 %v2426_v56, %v2432_v59 }
0x13ca   :  { %v2434_v61 = vmul.f32 %v2433_v60, %v2433_v60 }
0x13cc   :  { %v2435_v62 = vsel %vm23_vm1, %v2434_v61, 0.0  ;;  %v2860_v61 = vld [vmem:[%s7159_s2 + $0x360] sm:$0xff] }
0x13cd   :  { %2436 = vadd.xlane.f32.xlu1 %v2435_v62  ;;  %v2859_v62 = vld [vmem:[%s7159_s2 + $0x358] sm:$0xff] }
0x1456   :  { %v2437_v4 = vpop.xlane.xlu1 %2436 }
0x1457   :  { %v2438_v6 = vmul.f32 0.03125, %v2437_v4 }
0x1459   :  { %v2439_v7 = vadd.f32 1e-05, %v2438_v6  ;;  %v5091_v6 = vld [vmem:[%s7159_s2 + $0x451] ss:$0 sm:$0xff] }
0x145b   :  { %5939 = vrsqrt.f32 %v2439_v7 }
0x1468   :  { %v5940_v8 = vpop.eup %5939 }
0x1469   :  { %v2441_v10 = vmul.f32 %v5940_v8, %v2433_v60  ;;  %v2861_v60 = vld [vmem:[%s7159_s2 + $0x368] sm:$0xff]  ;;  %v5095_v8 = vld [vmem:[%s7159_s2 + $0x461] ss:$0 sm:$0xff] }
0x146b   :  { %v2446_v12 = vmul.f32 %v5080_v9, %v2441_v10 }
0x146d   :  { %v6532_v14 = vadd.f32 %v5081_v11, %v2446_v12 }
0x146f   :  { %5676 = vmatmul.mubr.msk.f32.vlgmr.msra.gmra.mxu0 %vm23_vm1, %v6532_v14 }
0x1470   :  { %5679 = vmatpush3.msra.mxu0 %v2459_v16  ;;  %5686 = vmatprep.mubr.msk.f32.mxu0 %vm5962_vm0, %v5961_v0 }
0x1471   :  { %5680 = vmatprep.subr.mxu0 %v5961_v0 }
0x1472   :  { %5681 = vmatpush3.msra.mxu0 %v2458_v17 }
0x1473   :  { %5682 = vmatprep.subr.mxu0 %v5961_v0 }
0x1474   :  { %5683 = vmatpush3.msra.mxu0 %v2457_v18 }
0x1475   :  { %5684 = vmatprep.subr.mxu0 %v5961_v0 }
0x1476   :  { %5685 = vmatpush3.msra.mxu0 %v2456_v5 }
0x1477   :  { %5687 = vmatmul.mubr.msk.f32.vlgmr.msra.gmra.mxu0 %vm23_vm1, %v6532_v14  ;;  %5689 = vmatprep.subr.mxu0 %v5961_v0 }
0x1478   :  { %5690 = vmatpush3.msra.mxu0 %v2463_v19  ;;  %5697 = vmatprep.mubr.msk.f32.mxu0 %vm5962_vm0, %v5961_v0 }
0x1479   :  { %5691 = vmatprep.subr.mxu0 %v5961_v0 }
0x147a   :  { %5692 = vmatpush3.msra.mxu0 %v2462_v20 }
0x147b   :  { %5693 = vmatprep.subr.mxu0 %v5961_v0 }
0x147c   :  { %5694 = vmatpush3.msra.mxu0 %v2461_v21 }
0x147d   :  { %5695 = vmatprep.subr.mxu0 %v5961_v0 }
0x147e   :  { %5696 = vmatpush3.msra.mxu0 %v2460_v22 }
0x147f   :  { %5698 = vmatmul.mubr.msk.f32.vlgmr.msra.gmra.mxu0 %vm23_vm1, %v6532_v14  ;;  %5700 = vmatprep.subr.mxu0 %v5961_v0 }
0x1480   :  { %5702 = vmatprep.mubr.msk.f32.mxu0 %vm5962_vm0, %v5961_v0 }
0x152f   :  { %v2540_v23 = vpop.f32.mrf.mxu0 }
0x1530   :  { %v2541_v31 = vadd.f32 %v5082_v27, %v2540_v23  ;;  %v3252_v23 = vld [vmem:[%s7159_s2 + $0x470] sm:$0xff]  ;;  %v2853_v27 = vld [vmem:[%s7159_s2 + $0x468] sm:$0xff] }
0x1531   :  { %v5677_v24 = vpop.f32.mrf.mxu0 }
0x1537   :  { %v2614_v26 = vpop.f32.mrf.mxu0 }
0x1538   :  { %v2615_v29 = vadd.f32 %v5084_v25, %v2614_v26 }
0x1539   :  { %v5688_v30 = vpop.f32.mrf.mxu0 }
0x153a   :  { %5701 = vmatpush3.xpose.msk.msra.mxu0 %vm102_vm2, %v2615_v29  ;;  %v3406_v29 = vld [vmem:[%s7159_s2 + $0x3c8] sm:$0xff]  ;;  %v3405_v30 = vld [vmem:[%s7159_s2 + $0x3c0] sm:$0xff] }
0x153b   :  { %5710 = vmatprep.subr.mxu0 %v5961_v0 }
0x153d   :  { %5703 = vmatmul.mubr.msk.f32.vlgmr.msra.gmra.mxu0 %vm102_vm2, %v2541_v31  ;;  %v3404_v31 = vld [vmem:[%s7159_s2 + $0x3b8] sm:$0xff] }
0x153e   :  { %5711 = vmatpush3.msra.mxu0 %v2857_v32  ;;  %5718 = vmatprep.mubr.msk.f32.mxu0 %vm5962_vm0, %v5961_v0  ;;  %v3403_v32 = vld [vmem:[%s7159_s2 + $0x3b0] sm:$0xff] }
0x153f   :  { %v2688_v35 = vpop.f32.mrf.mxu0  ;;  %5712 = vmatprep.subr.mxu0 %v5961_v0 }
0x1540   :  { %v2689_v37 = vadd.f32 %v5086_v33, %v2688_v35  ;;  %5713 = vmatpush3.msra.mxu0 %v2856_v34  ;;  %v3402_v33 = vld [vmem:[%s7159_s2 + $0x3a8] sm:$0xff]  ;;  %v3401_v35 = vld [vmem:[%s7159_s2 + $0x3a0] sm:$0xff] }
0x1541   :  { %v5699_v38 = vpop.f32.mrf.mxu0  ;;  %5714 = vmatprep.subr.mxu0 %v5961_v0 }
0x1542   :  { %5706 = vmatpush3.msra.mxu1 %v2689_v37  ;;  %5715 = vmatpush3.msra.mxu0 %v2855_v36  ;;  %v3400_v37 = vld [vmem:[%s7159_s2 + $0x398] sm:$0xff] }
0x1543   :  { %5716 = vmatprep.subr.mxu0 %v5961_v0  ;;  %5721 = vmatprep.subr.mxu1 %v5961_v0 }
0x1544   :  { %5717 = vmatpush3.msra.mxu0 %v2854_v39  ;;  %v3399_v39 = vld [vmem:[%s7159_s2 + $0x390] sm:$0xff] }
0x1545   :  { %5719 = vmatmul.mubr.msk.f32.vlgmr.msra.gmra.mxu0 %vm23_vm1, %v6532_v14  ;;  %5732 = vmatprep.subr.mxu0 %v5961_v0 }
0x1546   :  { %5733 = vmatpush3.msra.mxu0 %v2865_v40  ;;  %5740 = vmatprep.mubr.msk.f32.mxu0 %vm5962_vm0, %v5961_v0 }
0x1547   :  { %5734 = vmatprep.subr.mxu0 %v5961_v0 }
0x1548   :  { %5735 = vmatpush3.msra.mxu0 %v2864_v41  ;;  %v3410_v41 = vld [vmem:[%s7159_s2 + $0x3e8] sm:$0xff] }
0x1549   :  { %5736 = vmatprep.subr.mxu0 %v5961_v0 }
0x154a   :  { %5737 = vmatpush3.msra.mxu0 %v2863_v42  ;;  %v3409_v42 = vld [vmem:[%s7159_s2 + $0x3e0] sm:$0xff] }
0x154b   :  { %5738 = vmatprep.subr.mxu0 %v5961_v0 }
0x154c   :  { %5739 = vmatpush3.msra.mxu0 %v2862_v43  ;;  %v5104_v43 = vld [vmem:[%s7159_s2 + $0x45a] ss:$0 sm:$0xff] }
0x154d   :  { %5741 = vmatmul.mubr.msk.f32.vlgmr.msra.gmra.mxu0 %vm23_vm1, %v6532_v14  ;;  %5753 = vmatprep.subr.mxu0 %v5961_v0 }
0x154e   :  { %5755 = vmatprep.mubr.msk.f32.mxu0 %vm5962_vm0, %v5961_v0  ;;  %5754 = vmatpush3.msra.mxu0 %v3252_v23 }
0x154f   :  { %5763 = vmatprep.subr.mxu0 %v5961_v0 }
0x15fd   :  { %v2764_v44 = vpop.f32.mrf.mxu0 }
0x15fe   :  { %v2768_v45 = vmul.f32 0.35355338, %v2764_v44  ;;  %v3408_v44 = vld [vmem:[%s7159_s2 + $0x3d8] sm:$0xff] }
0x15ff   :  { %v5704_v46 = vpop.f32.mrf.mxu0 }
0x1600   :  { %v2769_v47 = vsel %vm102_vm2, %v2768_v45, -inf }
0x1601   :  { %2770 = vmax.xlane.f32.xlu0 %v2769_v47  ;;  %v3407_v47 = vld [vmem:[%s7159_s2 + $0x3d0] sm:$0xff] }
0x1605   :  { %v2939_v48 = vpop.f32.mrf.mxu0 }
0x1606   :  { %v2940_v10 = vadd.f32 %v5091_v6, %v2939_v48  ;;  %v3797_v6 = vld [vmem:[%s7159_s2 + $0x478] sm:$0xff] }
0x1607   :  { %v5720_v49 = vpop.f32.mrf.mxu0 }
0x160d   :  { %v3087_v50 = vpop.f32.mrf.mxu0 }
0x160e   :  { %v3088_v11 = vadd.f32 %v5095_v8, %v3087_v50 }
0x160f   :  { %v5742_v51 = vpop.f32.mrf.mxu0 }
0x1610   :  { %v5102_v51 = vld [vmem:[%s7159_s2 + $0x452] ss:$0 sm:$0xff] }
0x168a   :  { %v2771_v52 = vpop.xlane.xlu0 %2770 }
0x168b   :  { %v2772_v53 = vsub.f32 %v2768_v45, %v2771_v52 }
0x168d   :  { %v2773_v54 = vmul.f32 1.442695, %v2772_v53 }
0x168f   :  { %5941 = vpow2.f32 %v2773_v54 }
0x169c   :  { %v5942_v55 = vpop.eup %5941 }
0x169d   :  { %v2775_v56 = vsel %vm102_vm2, %v5942_v55, 0.0 }
0x169e   :  { %2776 = vadd.xlane.f32.xlu1 %v2775_v56 }
0x1727   :  { %v2777_v57 = vpop.xlane.xlu1 %2776 }
0x1728   :  { %5943 = vrcp.f32 %v2777_v57 }
0x1735   :  { %v5944_v58 = vpop.eup %5943 }
0x1736   :  { %v2779_v59 = vmul.f32 %v5944_v58, %v5942_v55  ;;  %v5106_v55 = vld [vmem:[%s7159_s2 + $0x462] ss:$0 sm:$0xff] }
0x1738   :  { %5708 = vmatmul.mubr.msk.f32.vlgmr.msra.gmra.mxu1 %vm102_vm2, %v2779_v59 }
0x1739   :  { %5722 = vmatpush3.msra.mxu1 %v2861_v60  ;;  %5729 = vmatprep.mubr.msk.f32.mxu1 %vm5962_vm0, %v5961_v0 }
0x173a   :  { %5723 = vmatprep.subr.mxu1 %v5961_v0 }
0x173b   :  { %5724 = vmatpush3.msra.mxu1 %v2860_v61 }
0x173c   :  { %5725 = vmatprep.subr.mxu1 %v5961_v0 }
0x173d   :  { %5726 = vmatpush3.msra.mxu1 %v2859_v62 }
0x173e   :  { %5727 = vmatprep.subr.mxu1 %v5961_v0 }
0x173f   :  { %5728 = vmatpush3.msra.mxu1 %v2858_v63 }
0x1740   :  { %5730 = vmatmul.mubr.msk.f32.vlgmr.msra.gmra.mxu1 %vm23_vm1, %v6532_v14  ;;  %5743 = vmatprep.subr.mxu1 %v5961_v0 }
0x1741   :  { %5745 = vmatprep.mubr.msk.f32.mxu1 %vm5962_vm0, %v5961_v0 }
0x17f8   :  { %v2849_v1 = vpop.f32.mrf.mxu1 }
0x17fa   :  { %v5709_v2 = vpop.f32.mrf.mxu1 }
0x1800   :  { %v3013_v4 = vpop.f32.mrf.mxu1 }
0x1801   :  { %v3014_v7 = vadd.f32 %v5093_v3, %v3013_v4 }
0x1802   :  { %v5731_v9 = vpop.f32.mrf.mxu1 }
0x1803   :  { %5744 = vmatpush3.xpose.msk.msra.mxu1 %vm102_vm2, %v3014_v7 }
0x1804   :  { %5748 = vmatprep.subr.mxu1 %v5961_v0 }
0x1806   :  { %5746 = vmatmul.mubr.msk.f32.vlgmr.msra.gmra.mxu1 %vm102_vm2, %v2940_v10  ;;  %v3875_v10 = vld [vmem:[%s7159_s2 + $0x408] sm:$0xff] }
0x1807   :  { %5749 = vmatpush3.msra.mxu1 %v3088_v11  ;;  %5750 = vmatprep.mubr.msk.f32.mxu1 %vm5962_vm0, %v5961_v0  ;;  %v3874_v11 = vld [vmem:[%s7159_s2 + $0x400] sm:$0xff] }
0x1808   :  { %5758 = vmatprep.subr.mxu1 %v5961_v0 }
0x18c6   :  { %v3163_v12 = vpop.f32.mrf.mxu1 }
0x18c7   :  { %v3167_v16 = vmul.f32 0.35355338, %v3163_v12  ;;  %v3873_v12 = vld [vmem:[%s7159_s2 + $0x3f8] sm:$0xff] }
0x18c8   :  { %v5747_v17 = vpop.f32.mrf.mxu1 }
0x18c9   :  { %v3168_v18 = vsel %vm102_vm2, %v3167_v16, -inf  ;;  %v3883_v17 = vld [vmem:[%s7159_s2 + $0x448] sm:$0xff] }
0x18ca   :  { %3169 = vmax.xlane.f32.xlu0 %v3168_v18  ;;  %v3882_v18 = vld [vmem:[%s7159_s2 + $0x440] sm:$0xff] }
0x1953   :  { %v3170_v5 = vpop.xlane.xlu0 %3169 }
0x1954   :  { %v3171_v19 = vsub.f32 %v3167_v16, %v3170_v5  ;;  %v3872_v16 = vld [vmem:[%s7159_s2 + $0x3f0] sm:$0xff]  ;;  %v3881_v5 = vld [vmem:[%s7159_s2 + $0x438] sm:$0xff] }
0x1956   :  { %v3172_v20 = vmul.f32 1.442695, %v3171_v19  ;;  %v3880_v19 = vld [vmem:[%s7159_s2 + $0x430] sm:$0xff] }
0x1958   :  { %5945 = vpow2.f32 %v3172_v20  ;;  %v3879_v20 = vld [vmem:[%s7159_s2 + $0x428] sm:$0xff] }
0x1965   :  { %v5946_v21 = vpop.eup %5945 }
0x1966   :  { %v3174_v22 = vsel %vm102_vm2, %v5946_v21, 0.0 }
0x1967   :  { %3175 = vadd.xlane.f32.xlu1 %v3174_v22  ;;  %v3878_v22 = vld [vmem:[%s7159_s2 + $0x420] sm:$0xff] }
0x19f0   :  { %v3176_v24 = vpop.xlane.xlu1 %3175 }
0x19f1   :  { %5947 = vrcp.f32 %v3176_v24  ;;  %v3877_v24 = vld [vmem:[%s7159_s2 + $0x418] sm:$0xff] }
0x19fe   :  { %v5948_v25 = vpop.eup %5947 }
0x19ff   :  { %v3178_v26 = vmul.f32 %v5948_v25, %v5946_v21  ;;  %v3876_v25 = vld [vmem:[%s7159_s2 + $0x410] sm:$0xff] }
0x1a01   :  { %5751 = vmatmul.mubr.msk.f32.vlgmr.msra.gmra.mxu1 %vm102_vm2, %v3178_v26 }
0x1a02   :  { %5759 = vmatpush3.msra.mxu1 %v2853_v27  ;;  %5760 = vmatprep.mubr.msk.f32.mxu1 %vm5962_vm0, %v5961_v0 }
0x1a03   :  { %5774 = vmatprep.subr.mxu1 %v5961_v0 }
0x1a05   :  { %5761 = vmatmul.mubr.msk.f32.vlgmr.msra.gmra.mxu1 %vm102_vm2, %v2849_v1 }
0x1a06   :  { %5775 = vmatpush3.msra.mxu1 %v3406_v29  ;;  %5782 = vmatprep.mubr.msk.f32.mxu1 %vm5962_vm0, %v5961_v0 }
0x1a07   :  { %5776 = vmatprep.subr.mxu1 %v5961_v0 }
0x1a08   :  { %5777 = vmatpush3.msra.mxu1 %v3405_v30 }
0x1a09   :  { %5778 = vmatprep.subr.mxu1 %v5961_v0 }
0x1a0a   :  { %5779 = vmatpush3.msra.mxu1 %v3404_v31 }
0x1a0b   :  { %5780 = vmatprep.subr.mxu1 %v5961_v0 }
0x1a0c   :  { %5781 = vmatpush3.msra.mxu1 %v3403_v32 }
0x1a0d   :  { %5783 = vmatmul.mubr.msk.f32.vlgmr.msra.gmra.mxu1 %vm23_vm1, %v6532_v14  ;;  %5796 = vmatprep.subr.mxu1 %v5961_v0 }
0x1a0e   :  { %5798 = vmatprep.mubr.msk.f32.mxu1 %vm5962_vm0, %v5961_v0 }
0x1ac1   :  { %v3248_v34 = vpop.f32.mrf.mxu1 }
0x1ac2   :  { %5756 = vmatmul.mubr.msk.f32.vlgmr.msra.gmra.mxu0 %vm102_vm2, %v3248_v34 }
0x1ac3   :  { %5764 = vmatpush3.msra.mxu0 %v3402_v33  ;;  %v5752_v36 = vpop.f32.mrf.mxu1  ;;  %5771 = vmatprep.mubr.msk.f32.mxu0 %vm5962_vm0, %v5961_v0 }
0x1ac4   :  { %5765 = vmatprep.subr.mxu0 %v5961_v0 }
0x1ac5   :  { %5766 = vmatpush3.msra.mxu0 %v3401_v35  ;;  %v6722_v38 = vpop.f32.mrf.mxu1  ;;  %v5114_v35 = vld [vmem:[%s7159_s2 + $0x45b] ss:$0 sm:$0xff] }
0x1ac6   :  { %5767 = vmatprep.subr.mxu0 %v5961_v0 }
0x1ac7   :  { %5768 = vmatpush3.msra.mxu0 %v3400_v37  ;;  %v5762_v40 = vpop.f32.mrf.mxu1  ;;  %v5112_v37 = vld [vmem:[%s7159_s2 + $0x453] ss:$0 sm:$0xff] }
0x1ac8   :  { %5769 = vmatprep.subr.mxu0 %v5961_v0  ;;  %v5116_v40 = vld [vmem:[%s7159_s2 + $0x463] ss:$0 sm:$0xff] }
0x1ac9   :  { %5770 = vmatpush3.msra.mxu0 %v3399_v39 }
0x1aca   :  { %5772 = vmatmul.mubr.msk.f32.vlgmr.msra.gmra.mxu0 %vm23_vm1, %v6532_v14  ;;  %5785 = vmatprep.subr.mxu0 %v5961_v0 }
0x1acb   :  { %5786 = vmatpush3.msra.mxu0 %v3410_v41  ;;  %5793 = vmatprep.mubr.msk.f32.mxu0 %vm5962_vm0, %v5961_v0 }
0x1acc   :  { %5787 = vmatprep.subr.mxu0 %v5961_v0 }
0x1acd   :  { %v3558_v45 = vpop.f32.mrf.mxu1  ;;  %5788 = vmatpush3.msra.mxu0 %v3409_v42 }
0x1ace   :  { %v3559_v46 = vadd.f32 %v5104_v43, %v3558_v45  ;;  %5789 = vmatprep.subr.mxu0 %v5961_v0 }
0x1acf   :  { %v5784_v48 = vpop.f32.mrf.mxu1  ;;  %5790 = vmatpush3.msra.mxu0 %v3408_v44 }
0x1ad0   :  { %5791 = vmatprep.subr.mxu0 %v5961_v0  ;;  %5797 = vmatpush3.xpose.msk.msra.mxu1 %vm102_vm2, %v3559_v46 }
0x1ad1   :  { %5792 = vmatpush3.msra.mxu0 %v3407_v47  ;;  %5801 = vmatprep.subr.mxu1 %v5961_v0 }
0x1ad2   :  { %5794 = vmatmul.mubr.msk.f32.vlgmr.msra.gmra.mxu0 %vm23_vm1, %v6532_v14  ;;  %5806 = vmatprep.subr.mxu0 %v5961_v0 }
0x1ad3   :  { %5808 = vmatprep.mubr.msk.f32.mxu0 %vm5962_vm0, %v5961_v0  ;;  %5807 = vmatpush3.msra.mxu0 %v3797_v6 }
0x1ad4   :  { %5822 = vmatprep.subr.mxu0 %v5961_v0 }
0x1b82   :  { %v6759_v49 = vpop.f32.mrf.mxu0 }
0x1b83   :  { %v3396_v31 = vadd.f32 %v6722_v38, %v6759_v49 }
0x1b84   :  { %v5757_v50 = vpop.f32.mrf.mxu0 }
0x1b8a   :  { %v3484_v52 = vpop.f32.mrf.mxu0 }
0x1b8b   :  { %v3485_v53 = vadd.f32 %v5102_v51, %v3484_v52 }
0x1b8c   :  { %v5773_v54 = vpop.f32.mrf.mxu0 }
0x1b8d   :  { %5799 = vmatmul.mubr.msk.f32.vlgmr.msra.gmra.mxu1 %vm102_vm2, %v3485_v53 }
0x1b8e   :  { %5803 = vmatprep.mubr.msk.f32.mxu1 %vm5962_vm0, %v5961_v0 }
0x1b92   :  { %v3632_v56 = vpop.f32.mrf.mxu0 }
0x1b93   :  { %v3633_v57 = vadd.f32 %v5106_v55, %v3632_v56  ;;  %v4270_v55 = vld [vmem:[%s7159_s2 + $0x480] sm:$0xff] }
0x1b94   :  { %v5795_v58 = vpop.f32.mrf.mxu0 }
0x1b95   :  { %5802 = vmatpush3.msra.mxu1 %v3633_v57 }
0x1b96   :  { %5811 = vmatprep.subr.mxu1 %v5961_v0 }
0x1c4d   :  { %v3708_v59 = vpop.f32.mrf.mxu1 }
0x1c4e   :  { %v3712_v60 = vmul.f32 0.35355338, %v3708_v59  ;;  %v5122_v59 = vld [vmem:[%s7159_s2 + $0x488] ss:$0 sm:$0xff] }
0x1c4f   :  { %v5800_v61 = vpop.f32.mrf.mxu1 }
0x1c50   :  { %v3713_v62 = vsel %vm102_vm2, %v3712_v60, -inf }
0x1c51   :  { %3714 = vmax.xlane.f32.xlu0 %v3713_v62 }
0x1cda   :  { %v3715_v63 = vpop.xlane.xlu0 %3714 }
0x1cdb   :  { %v3716_v1 = vsub.f32 %v3712_v60, %v3715_v63 }
0x1cdd   :  { %v3717_v2 = vmul.f32 1.442695, %v3716_v1 }
0x1cdf   :  { %5949 = vpow2.f32 %v3717_v2 }
0x1cec   :  { %v5950_v3 = vpop.eup %5949 }
0x1ced   :  { %v3719_v4 = vsel %vm102_vm2, %v5950_v3, 0.0 }
0x1cee   :  { %3720 = vadd.xlane.f32.xlu1 %v3719_v4 }
0x1d77   :  { %v3721_v7 = vpop.xlane.xlu1 %3720 }
0x1d78   :  { %5951 = vrcp.f32 %v3721_v7 }
0x1d85   :  { %v5952_v8 = vpop.eup %5951 }
0x1d86   :  { %v3723_v9 = vmul.f32 %v5952_v8, %v5950_v3  ;;  %v4380_v8 = vld [vmem:[%s7159_s2 + $0x4b8] sm:$0xff] }
0x1d88   :  { %5804 = vmatmul.mubr.msk.f32.vlgmr.msra.gmra.mxu1 %vm102_vm2, %v3723_v9  ;;  %v4378_v9 = vld [vmem:[%s7159_s2 + $0x4a8] sm:$0xff] }
0x1d89   :  { %5812 = vmatpush3.msra.mxu1 %v3875_v10  ;;  %5819 = vmatprep.mubr.msk.f32.mxu1 %vm5962_vm0, %v5961_v0  ;;  %v4377_v10 = vld [vmem:[%s7159_s2 + $0x4a0] sm:$0xff] }
0x1d8a   :  { %5813 = vmatprep.subr.mxu1 %v5961_v0 }
0x1d8b   :  { %5814 = vmatpush3.msra.mxu1 %v3874_v11  ;;  %v4475_v11 = vld [vmem:[%s7159_s2 + $0x540] sm:$0xff] }
0x1d8c   :  { %5815 = vmatprep.subr.mxu1 %v5961_v0 }
0x1d8d   :  { %5816 = vmatpush3.msra.mxu1 %v3873_v12  ;;  %v4474_v12 = vld [vmem:[%s7159_s2 + $0x538] sm:$0xff] }
0x1d8e   :  { %5817 = vmatprep.subr.mxu1 %v5961_v0 }
0x1d8f   :  { %5818 = vmatpush3.msra.mxu1 %v3872_v16  ;;  %v4473_v16 = vld [vmem:[%s7159_s2 + $0x530] sm:$0xff] }
0x1d90   :  { %5820 = vmatmul.mubr.msk.f32.vlgmr.msra.gmra.mxu1 %vm23_vm1, %v6532_v14  ;;  %5833 = vmatprep.subr.mxu1 %v5961_v0 }
0x1d91   :  { %5834 = vmatpush3.msra.mxu1 %v3883_v17  ;;  %5841 = vmatprep.mubr.msk.f32.mxu1 %vm5962_vm0, %v5961_v0  ;;  %v4472_v17 = vld [vmem:[%s7159_s2 + $0x528] sm:$0xff] }
0x1d92   :  { %5835 = vmatprep.subr.mxu1 %v5961_v0 }
0x1d93   :  { %5836 = vmatpush3.msra.mxu1 %v3882_v18  ;;  %v4471_v18 = vld [vmem:[%s7159_s2 + $0x520] sm:$0xff] }
0x1d94   :  { %5837 = vmatprep.subr.mxu1 %v5961_v0 }
0x1d95   :  { %5838 = vmatpush3.msra.mxu1 %v3881_v5  ;;  %v4470_v5 = vld [vmem:[%s7159_s2 + $0x518] sm:$0xff] }
0x1d96   :  { %5839 = vmatprep.subr.mxu1 %v5961_v0 }
0x1d97   :  { %5840 = vmatpush3.msra.mxu1 %v3880_v19  ;;  %v4469_v19 = vld [vmem:[%s7159_s2 + $0x510] sm:$0xff] }
0x1d98   :  { %5842 = vmatmul.mubr.msk.f32.vlgmr.msra.gmra.mxu1 %vm23_vm1, %v6532_v14  ;;  %5854 = vmatprep.subr.mxu1 %v5961_v0 }
0x1d99   :  { %5856 = vmatprep.mubr.msk.f32.mxu1 %vm5962_vm0, %v5961_v0  ;;  %5855 = vmatpush3.msra.mxu1 %v4270_v55 }
0x1d9a   :  { %5870 = vmatprep.subr.mxu1 %v5961_v0 }
0x1e48   :  { %v3793_v21 = vpop.f32.mrf.mxu1 }
0x1e49   :  { %5809 = vmatmul.mubr.msk.f32.vlgmr.msra.gmra.mxu0 %vm102_vm2, %v3793_v21  ;;  %v4467_v21 = vld [vmem:[%s7159_s2 + $0x500] sm:$0xff] }
0x1e4a   :  { %5823 = vmatpush3.msra.mxu0 %v3879_v20  ;;  %v5805_v23 = vpop.f32.mrf.mxu1  ;;  %5830 = vmatprep.mubr.msk.f32.mxu0 %vm5962_vm0, %v5961_v0  ;;  %v4468_v20 = vld [vmem:[%s7159_s2 + $0x508] sm:$0xff] }
0x1e4b   :  { %5824 = vmatprep.subr.mxu0 %v5961_v0  ;;  %v4465_v23 = vld [vmem:[%s7159_s2 + $0x4f0] sm:$0xff] }
0x1e4c   :  { %5825 = vmatpush3.msra.mxu0 %v3878_v22  ;;  %v4466_v22 = vld [vmem:[%s7159_s2 + $0x4f8] sm:$0xff] }
0x1e4d   :  { %5826 = vmatprep.subr.mxu0 %v5961_v0 }
0x1e4e   :  { %5827 = vmatpush3.msra.mxu0 %v3877_v24  ;;  %v4464_v24 = vld [vmem:[%s7159_s2 + $0x4e8] sm:$0xff] }
0x1e4f   :  { %5828 = vmatprep.subr.mxu0 %v5961_v0 }
0x1e50   :  { %v3957_v26 = vpop.f32.mrf.mxu1  ;;  %5829 = vmatpush3.msra.mxu0 %v3876_v25  ;;  %v4463_v25 = vld [vmem:[%s7159_s2 + $0x4e0] sm:$0xff] }
0x1e51   :  { %5831 = vmatmul.mubr.msk.f32.vlgmr.msra.gmra.mxu0 %vm23_vm1, %v6532_v14  ;;  %5844 = vmatprep.subr.mxu0 %v5961_v0  ;;  %v3958_v38 = vadd.f32 %v5112_v37, %v3957_v26  ;;  %v4461_v37 = vld [vmem:[%s7159_s2 + $0x4d0] sm:$0xff] }
0x1e52   :  { %v5821_v27 = vpop.f32.mrf.mxu1  ;;  %5846 = vmatprep.mubr.msk.f32.mxu0 %vm5962_vm0, %v5961_v0 }
0x1e58   :  { %v4105_v29 = vpop.f32.mrf.mxu1 }
0x1e59   :  { %v4106_v42 = vadd.f32 %v5116_v40, %v4105_v29  ;;  %v5032_v40 = vld [vmem:[%s7159_s2 + $0x38] ss:$0 sm:$0xff] }
0x1e5a   :  { %v5843_v30 = vpop.f32.mrf.mxu1 }
0x1f09   :  { %v3867_v32 = vpop.f32.mrf.mxu0 }
0x1f0a   :  { %v3871_v33 = vadd.f32 %v3867_v32, %v3396_v31  ;;  %v5123_v31 = vld [vmem:[%s7159_s2 + $0x490] ss:$0 sm:$0xff] }
0x1f0b   :  { %v5810_v34 = vpop.f32.mrf.mxu0 }
0x1f11   :  { %v4031_v36 = vpop.f32.mrf.mxu0 }
0x1f12   :  { %v4032_v39 = vadd.f32 %v5114_v35, %v4031_v36  ;;  %v4462_v36 = vld [vmem:[%s7159_s2 + $0x4d8] sm:$0xff] }
0x1f13   :  { %v5832_v41 = vpop.f32.mrf.mxu0 }
0x1f14   :  { %5845 = vmatpush3.xpose.msk.msra.mxu0 %vm102_vm2, %v4032_v39  ;;  %v4460_v39 = vld [vmem:[%s7159_s2 + $0x4c8] sm:$0xff]  ;;  %v325_v41 = vadd.f32 %v5032_v40, %v6089_v28  ;;  %v4789_v40 = vld [vmem:[%s7159_s2 + $0x650] sm:$0xff] }
0x1f15   :  { %5849 = vmatprep.subr.mxu0 %v5961_v0 }
0x1f17   :  { %5847 = vmatmul.mubr.msk.f32.vlgmr.msra.gmra.mxu0 %vm102_vm2, %v3958_v38  ;;  %v6971_v38 = vadd.f32 %v325_v41, %v176_v15  ;;  %v4937_v15 = vld [vmem:[%s7159_s2 + $0x570] sm:$0xff] }
0x1f18   :  { %5850 = vmatpush3.msra.mxu0 %v4106_v42  ;;  %5851 = vmatprep.mubr.msk.f32.mxu0 %vm5962_vm0, %v5961_v0  ;;  %v4773_v41 = vld [vmem:[%s7159_s2 + $0x5d0] sm:$0xff] }
0x1f19   :  { %5859 = vmatprep.subr.mxu0 %v5961_v0  ;;  %v4754_v42 = vsel %vm179_vm3, %v6971_v38, 0.0 }
0x1fd7   :  { %v4181_v43 = vpop.f32.mrf.mxu0 }
0x1fd8   :  { %v4185_v44 = vmul.f32 0.35355338, %v4181_v43  ;;  %v4755_v43 = vrot.slane %v4754_v42, 4 }
0x1fd9   :  { %v5848_v45 = vpop.f32.mrf.mxu0 }
0x1fda   :  { %v4186_v46 = vsel %vm102_vm2, %v4185_v44, -inf }
0x1fdb   :  { %4187 = vmax.xlane.f32.xlu0 %v4186_v46 }
0x2064   :  { %v4188_v47 = vpop.xlane.xlu0 %4187 }
0x2065   :  { %v4189_v48 = vsub.f32 %v4185_v44, %v4188_v47  ;;  %v4756_v44 = vadd.f32 %v4755_v43, %v4754_v42  ;;  %v5125_v47 = vld [vmem:[%s7159_s2 + $0x4c0] ss:$0 sm:$0xff]  ;;  %v4772_v42 = vld [vmem:[%s7159_s2 + $0x5c8] sm:$0xff] }
0x2066   :  { %v4787_v43 = vld [vmem:[%s7159_s2 + $0x640] sm:$0xff] }
0x2067   :  { %v4190_v49 = vmul.f32 1.442695, %v4189_v48  ;;  %v4757_v45 = vrot.slane %v4756_v44, 2 }
0x2069   :  { %5953 = vpow2.f32 %v4190_v49  ;;  %v4758_v46 = vadd.f32 %v4757_v45, %v4756_v44  ;;  %v4771_v44 = vld [vmem:[%s7159_s2 + $0x5c0] sm:$0xff]  ;;  %v4786_v45 = vld [vmem:[%s7159_s2 + $0x638] sm:$0xff] }
0x206b   :  { %v4759_v48 = vrot.slane %v4758_v46, 1 }
0x206d   :  { %v4760_v28 = vadd.f32 %v4759_v48, %v4758_v46  ;;  %v4770_v46 = vld [vmem:[%s7159_s2 + $0x5b8] sm:$0xff]  ;;  %v4769_v48 = vld [vmem:[%s7159_s2 + $0x5b0] sm:$0xff] }
0x2076   :  { %v5954_v50 = vpop.eup %5953 }
0x2077   :  { %v4192_v51 = vsel %vm102_vm2, %v5954_v50, 0.0 }
0x2078   :  { %4193 = vadd.xlane.f32.xlu1 %v4192_v51 }
0x2101   :  { %v4194_v52 = vpop.xlane.xlu1 %4193 }
0x2102   :  { %5955 = vrcp.f32 %v4194_v52 }
0x210f   :  { %v5956_v53 = vpop.eup %5955 }
0x2110   :  { %v4196_v54 = vmul.f32 %v5956_v53, %v5954_v50  ;;  %v4762_v53 = vmul.f32 0.125, %v4760_v28  ;;  %v4767_v28 = vld [vmem:[%s7159_s2 + $0x5a0] sm:$0xff] }
0x2112   :  { %5852 = vmatmul.mubr.msk.f32.vlgmr.msra.gmra.mxu0 %vm102_vm2, %v4196_v54  ;;  %v5127_v54 = vld [vmem:[%s7159_s2 + $0x548] ss:$0 sm:$0xff] }
0x2113   :  { %5867 = vmatprep.mubr.msk.f32.mxu0 %vm5962_vm0, %v5961_v0  ;;  %5860 = vmatpush3.msra.mxu0 %v4380_v8  ;;  %v4585_v8 = vld [vmem:[%s7162_s3 + $0x40] sm:$0xff] }
0x2114   :  { %5861 = vmatprep.subr.mxu0 %v5961_v0 }
0x21d2   :  { %v4266_v56 = vpop.f32.mrf.mxu0 }
0x21d3   :  { %5857 = vmatmul.mubr.msk.f32.vlgmr.msra.gmra.mxu1 %vm102_vm2, %v4266_v56 }
0x21d4   :  { %v5853_v57 = vpop.f32.mrf.mxu0  ;;  %5902 = vmatprep.mubr.msk.f32.mxu1 %vm5962_vm0, %v5961_v0  ;;  %5871 = vmatpush3.msra.mxu1 %v4475_v11  ;;  %v4581_v11 = vld [vmem:[%s7162_s3 + $0x20] sm:$0xff] }
0x21d5   :  { %5872 = vmatprep.subr.mxu1 %v5961_v0 }
0x21d6   :  { %5873 = vmatpush3.msra.mxu1 %v4474_v12  ;;  %v4580_v12 = vld [vmem:[%s7162_s3 + $0x18] sm:$0xff] }
0x21d7   :  { %5874 = vmatprep.subr.mxu1 %v5961_v0 }
0x21d8   :  { %5875 = vmatpush3.msra.mxu1 %v4473_v16 }
0x21d9   :  { %5876 = vmatprep.subr.mxu1 %v5961_v0 }
0x21da   :  { %5877 = vmatpush3.msra.mxu1 %v4472_v17 }
0x21db   :  { %5878 = vmatprep.subr.mxu1 %v5961_v0 }
0x21dc   :  { %5879 = vmatpush3.msra.mxu1 %v4471_v18 }
0x21dd   :  { %5880 = vmatprep.subr.mxu1 %v5961_v0 }
0x21de   :  { %5881 = vmatpush3.msra.mxu1 %v4470_v5 }
0x21df   :  { %5882 = vmatprep.subr.mxu1 %v5961_v0 }
0x21e0   :  { %5883 = vmatpush3.msra.mxu1 %v4469_v19  ;;  %v5128_v19 = vld [vmem:[%s7159_s2 + $0x550] ss:$0 sm:$0xff] }
0x21e1   :  { %5884 = vmatprep.subr.mxu1 %v5961_v0 }
0x21e2   :  { %5885 = vmatpush3.msra.mxu1 %v4468_v20 }
0x21e3   :  { %5886 = vmatprep.subr.mxu1 %v5961_v0 }
0x21e4   :  { %5887 = vmatpush3.msra.mxu1 %v4467_v21  ;;  %v5129_v21 = vld [vmem:[%s7159_s2 + $0x558] ss:$0 sm:$0xff] }
0x21e5   :  { %5888 = vmatprep.subr.mxu1 %v5961_v0 }
0x21e6   :  { %5889 = vmatpush3.msra.mxu1 %v4466_v22 }
0x21e7   :  { %5890 = vmatprep.subr.mxu1 %v5961_v0 }
0x21e8   :  { %5891 = vmatpush3.msra.mxu1 %v4465_v23 }
0x21e9   :  { %5892 = vmatprep.subr.mxu1 %v5961_v0 }
0x21ea   :  { %5893 = vmatpush3.msra.mxu1 %v4464_v24  ;;  %v4579_v24 = vld [vmem:[%s7162_s3 + $0x10] sm:$0xff] }
0x21eb   :  { %5894 = vmatprep.subr.mxu1 %v5961_v0 }
0x21ec   :  { %5895 = vmatpush3.msra.mxu1 %v4463_v25  ;;  %v4578_v25 = vld [vmem:[%s7162_s3 + $0x8] sm:$0xff] }
0x21ed   :  { %5896 = vmatprep.subr.mxu1 %v5961_v0 }
0x21ee   :  { %5897 = vmatpush3.msra.mxu1 %v4462_v36  ;;  %v4775_v36 = vld [vmem:[%s7159_s2 + $0x5e0] sm:$0xff] }
0x21ef   :  { %5898 = vmatprep.subr.mxu1 %v5961_v0 }
0x21f0   :  { %5899 = vmatpush3.msra.mxu1 %v4461_v37  ;;  %v4790_v37 = vld [vmem:[%s7159_s2 + $0x658] sm:$0xff] }
0x21f1   :  { %5900 = vmatprep.subr.mxu1 %v5961_v0 }
0x21f2   :  { %5901 = vmatpush3.msra.mxu1 %v4460_v39  ;;  %v4774_v39 = vld [vmem:[%s7159_s2 + $0x5d8] sm:$0xff] }
0x21f3   :  { %5912 = vmatprep.subr.mxu1 %v5961_v0 }
0x2293   :  { %v4340_v58 = vpop.f32.mrf.mxu1 }
0x2294   :  { %v4344_v60 = vadd.f32 %v4340_v58, %v3871_v33  ;;  %v5124_v33 = vld [vmem:[%s7159_s2 + $0x498] ss:$0 sm:$0xff] }
0x2295   :  { %v5858_v61 = vpop.f32.mrf.mxu1 }
0x2296   :  { %v4350_v62 = vadd.f32 %v5122_v59, %v4344_v60 }
0x2298   :  { %v4351_v63 = vadd.f32 %v4350_v62, %v6532_v14  ;;  %v4379_v14 = vld [vmem:[%s7159_s2 + $0x4b0] sm:$0xff] }
0x2299   :  { %5862 = vmatpush3.msra.mxu0 %v4379_v14  ;;  %v4584_v14 = vld [vmem:[%s7162_s3 + $0x38] sm:$0xff] }
0x229a   :  { %v4354_v1 = vsel %vm23_vm1, %v4351_v63, 0.0  ;;  %5863 = vmatprep.subr.mxu0 %v5961_v0 }
0x229b   :  { %4355 = vadd.xlane.f32.xlu0 %v4354_v1  ;;  %5864 = vmatpush3.msra.mxu0 %v4378_v9  ;;  %v4583_v9 = vld [vmem:[%s7162_s3 + $0x30] sm:$0xff] }
0x229c   :  { %5865 = vmatprep.subr.mxu0 %v5961_v0 }
0x229d   :  { %5866 = vmatpush3.msra.mxu0 %v4377_v10  ;;  %v4582_v10 = vld [vmem:[%s7162_s3 + $0x28] sm:$0xff] }
0x2324   :  { %v4356_v2 = vpop.xlane.xlu0 %4355 }
0x2325   :  { %v4357_v3 = vmul.f32 0.03125, %v4356_v2 }
0x2327   :  { %v4358_v4 = vsub.f32 %v4351_v63, %v4357_v3 }
0x2329   :  { %v4359_v6 = vmul.f32 %v4358_v4, %v4358_v4 }
0x232b   :  { %v4360_v7 = vsel %vm23_vm1, %v4359_v6, 0.0  ;;  %v4587_v6 = vld [vmem:[%s7162_s3 + $0x50] sm:$0xff] }
0x232c   :  { %4361 = vadd.xlane.f32.xlu1 %v4360_v7  ;;  %v4586_v7 = vld [vmem:[%s7162_s3 + $0x48] sm:$0xff] }
0x23b5   :  { %v4362_v26 = vpop.xlane.xlu1 %4361 }
0x23b6   :  { %v4363_v27 = vmul.f32 0.03125, %v4362_v26  ;;  %v4577_v26 = vld [vmem:[%s7162_s3] sm:$0xff] }
0x23b8   :  { %v4364_v29 = vadd.f32 1e-05, %v4363_v27  ;;  %v4796_v27 = vld [vmem:[%s7159_s2 + $0x568] sm:$0xff] }
0x23ba   :  { %5957 = vrsqrt.f32 %v4364_v29  ;;  %v4795_v29 = vld [vmem:[%s7159_s2 + $0x560] sm:$0xff] }
0x23c7   :  { %v5958_v30 = vpop.eup %5957 }
0x23c8   :  { %v4366_v32 = vmul.f32 %v5958_v30, %v4358_v4  ;;  %v4588_v4 = vld [vmem:[%s7162_s3 + $0x58] sm:$0xff] }
0x23c9   :  { %4618 = vmatprep.subr.mxu0 %v4588_v4  ;;  %v4794_v30 = vld [vmem:[%s7159_s2 + $0x678] sm:$0xff] }
0x23ca   :  { %v4371_v34 = vmul.f32 %v5123_v31, %v4366_v32  ;;  %v4778_v31 = vld [vmem:[%s7159_s2 + $0x5f8] sm:$0xff]  ;;  %v4793_v32 = vld [vmem:[%s7159_s2 + $0x670] sm:$0xff] }
0x23cc   :  { %v4376_v35 = vadd.f32 %v5124_v33, %v4371_v34  ;;  %v4777_v33 = vld [vmem:[%s7159_s2 + $0x5f0] sm:$0xff]  ;;  %v4776_v34 = vld [vmem:[%s7159_s2 + $0x5e8] sm:$0xff] }
0x23ce   :  { %5868 = vmatmul.mubr.msk.f32.vlgmr.msra.gmra.mxu0 %vm23_vm1, %v4376_v35 }
0x23cf   :  { %4658 = vmatprep.mubr.f32.mxu0 %v5961_v0  ;;  %4619 = vmatpush1.msra.mxu0 %v4587_v6 }
0x23d0   :  { %4620 = vmatprep.subr.mxu0 %v4586_v7 }
0x23d1   :  { %4621 = vmatpush1.msra.mxu0 %v4585_v8 }
0x23d2   :  { %4622 = vmatprep.subr.mxu0 %v4584_v14 }
0x23d3   :  { %4623 = vmatpush1.msra.mxu0 %v4583_v9 }
0x23d4   :  { %4624 = vmatprep.subr.mxu0 %v4582_v10 }
0x23d5   :  { %4625 = vmatpush1.msra.mxu0 %v4581_v11 }
0x23d6   :  { %4696 = vmatprep.subr.mxu0 %v4580_v12 }
0x248e   :  { %v4455_v49 = vpop.f32.mrf.mxu0 }
0x248f   :  { %v4456_v50 = vadd.f32 %v5125_v47, %v4455_v49  ;;  %v4785_v47 = vld [vmem:[%s7159_s2 + $0x630] sm:$0xff]  ;;  %v4784_v49 = vld [vmem:[%s7159_s2 + $0x628] sm:$0xff] }
0x2490   :  { %v5869_v51 = vpop.f32.mrf.mxu0 }
0x2491   :  { %v4459_v52 = vmax.f32 %v4456_v50, 0.0  ;;  %v4768_v50 = vld [vmem:[%s7159_s2 + $0x5a8] sm:$0xff]  ;;  %v4783_v51 = vld [vmem:[%s7159_s2 + $0x620] sm:$0xff] }
0x2493   :  { %5903 = vmatmul.mubr.f32.vlgmr.msra.gmra.mxu1 %v4459_v52  ;;  %v4782_v52 = vld [vmem:[%s7159_s2 + $0x618] sm:$0xff] }
0x2494   :  { %5913 = vmatpush3.msra.mxu1 %v4938_v13  ;;  %5916 = vmatprep.mubr.msk.f32.mxu1 %vm5962_vm0, %v5961_v0  ;;  %v4766_v13 = vld [vmem:[%s7159_s2 + $0x598] sm:$0xff] }
0x2495   :  { %5914 = vmatprep.subr.mxu1 %v5961_v0 }
0x2496   :  { %5915 = vmatpush3.msra.mxu1 %v4937_v15  ;;  %v4781_v15 = vld [vmem:[%s7159_s2 + $0x610] sm:$0xff] }
0x2497   :  { %5917 = vmatmul.mubr.msk.f32.vlgmr.msra.gmra.mxu1 %vm179_vm3, %v4762_v53  ;;  %v4765_v53 = vld [vmem:[%s7159_s2 + $0x590] sm:$0xff] }
0x2553   :  { %v4547_v55 = vpop.f32.mrf.mxu1 }
0x2554   :  { %v4548_v56 = vadd.f32 %v5127_v54, %v4547_v55  ;;  %v4780_v54 = vld [vmem:[%s7159_s2 + $0x608] sm:$0xff] }
0x2555   :  { %v5904_v57 = vpop.f32.mrf.mxu1  ;;  %v4764_v55 = vld [vmem:[%s7159_s2 + $0x588] sm:$0xff] }
0x2556   :  { %v4551_v58 = vadd.f32 %v4548_v56, %v4376_v35  ;;  %v4791_v35 = vld [vmem:[%s7159_s2 + $0x660] sm:$0xff] }
0x2557   :  { %v6991_v59 = vpop.f32.mrf.mxu1  ;;  %v4779_v56 = vld [vmem:[%s7159_s2 + $0x600] sm:$0xff] }
0x2558   :  { %v4554_v60 = vsel %vm23_vm1, %v4551_v58, 0.0  ;;  %v4763_v57 = vld [vmem:[%s7159_s2 + $0x580] sm:$0xff] }
0x2559   :  { %4555 = vadd.xlane.f32.xlu0 %v4554_v60  ;;  %v5918_v61 = vpop.f32.mrf.mxu1 }
0x25e2   :  { %v4556_v62 = vpop.xlane.xlu0 %4555 }
0x25e3   :  { %v4557_v63 = vmul.f32 0.03125, %v4556_v62  ;;  %v5130_v62 = vld [vmem:[%s7162_s3 + $0x60] ss:$8 sm:$0x3] }
0x25e5   :  { %v4558_v1 = vsub.f32 %v4551_v58, %v4557_v63  ;;  %v4740_v58 = vlaneseq }
0x25e7   :  { %v4559_v2 = vmul.f32 %v4558_v1, %v4558_v1  ;;  %v4741_v60 = vshrl.u32 %v4740_v58, 7 }
0x25e9   :  { %v4560_v3 = vsel %vm23_vm1, %v4559_v2, 0.0  ;;  %v4746_v63 = vsub.s32 1, %v4741_v60 }
0x25ea   :  { %4561 = vadd.xlane.f32.xlu1 %v4560_v3 }
0x25eb   :  { %v4747_v7 = vrot.slane %v5130_v62, %v4746_v63 }
0x2673   :  { %v4562_v16 = vpop.xlane.xlu1 %4561 }
0x2674   :  { %v4563_v17 = vmul.f32 0.03125, %v4562_v16 }
0x2676   :  { %v4564_v18 = vadd.f32 1e-05, %v4563_v17 }
0x2678   :  { %5959 = vrsqrt.f32 %v4564_v18 }
0x2685   :  { %v5960_v5 = vpop.eup %5959 }
0x2686   :  { %v4566_v20 = vmul.f32 %v5960_v5, %v4558_v1  ;;  %v4742_v1 = vsub.s32 0, %v4741_v60 }
0x2688   :  { %v4571_v22 = vmul.f32 %v5128_v19, %v4566_v20  ;;  %v4743_v4 = vrot.slane %v5130_v62, %v4742_v1  ;;  %v5015_v20 = vrot.slane %v6991_v59, %v4742_v1 }
0x268a   :  { %v4576_v23 = vadd.f32 %v5129_v21, %v4571_v22  ;;  %v5135_v22 = vld [vmem:[%s7159_s2 + $0x680] ss:$0 sm:$0xff] }
0x268c   :  { %5131 = vmatmul.mubr.msk.f32.vlgmr.msra.gmra.mxu0 %vm23_vm1, %v4576_v23 }
0x268d   :  { %4697 = vmatpush1.msra.mxu0 %v4579_v24  ;;  %4732 = vmatprep.mubr.f32.mxu0 %v5961_v0 }
0x268e   :  { %4698 = vmatprep.subr.mxu0 %v4578_v25 }
0x268f   :  { %4699 = vmatpush1.msra.mxu0 %v4577_v26 }
0x2690   :  { %5132 = vmatmul.mubr.msk.f32.vlgmr.msra.gmra.mxu0 %vm179_vm3, %v6971_v38  ;;  %5905 = vmatprep.subr.mxu0 %v5961_v0 }
0x2691   :  { %5906 = vmatpush3.msra.mxu0 %v4796_v27  ;;  %5909 = vmatprep.mubr.msk.f32.mxu0 %vm5962_vm0, %v5961_v0 }
0x2692   :  { %5907 = vmatprep.subr.mxu0 %v5961_v0  ;;  %v4792_v0 = vld [vmem:[%s7159_s2 + $0x668] sm:$0xff] }
0x2693   :  { %5908 = vmatpush3.msra.mxu0 %v4795_v29 }
0x2694   :  { %5910 = vmatmul.mubr.msk.f32.vlgmr.msra.gmra.mxu0 %vm179_vm3, %v6971_v38  ;;  %5363 = vmatprep.subr.mxu0 %v4794_v30  ;;  %v4788_v38 = vld [vmem:[%s7159_s2 + $0x648] sm:$0xff] }
0x2695   :  { %5364 = vmatpush3.msra.mxu0 %v4778_v31 }
0x2696   :  { %5365 = vmatprep.subr.mxu0 %v4793_v32 }
0x2697   :  { %5366 = vmatpush3.msra.mxu0 %v4777_v33 }
0x2698   :  { %5367 = vmatprep.subr.mxu0 %v4792_v0 }
0x2699   :  { %5368 = vmatpush3.msra.mxu0 %v4776_v34 }
0x269a   :  { %5369 = vmatprep.subr.mxu0 %v4791_v35 }
0x269b   :  { %5370 = vmatpush3.msra.mxu0 %v4775_v36 }
0x269c   :  { %5371 = vmatprep.subr.mxu0 %v4790_v37 }
0x269d   :  { %5372 = vmatpush3.msra.mxu0 %v4774_v39 }
0x269e   :  { %5373 = vmatprep.subr.mxu0 %v4789_v40 }
0x269f   :  { %5374 = vmatpush3.msra.mxu0 %v4773_v41 }
0x26a0   :  { %5375 = vmatprep.subr.mxu0 %v4788_v38 }
0x26a1   :  { %5376 = vmatpush3.msra.mxu0 %v4772_v42 }
0x26a2   :  { %5377 = vmatprep.subr.mxu0 %v4787_v43 }
0x26a3   :  { %5378 = vmatpush3.msra.mxu0 %v4771_v44 }
0x26a4   :  { %5379 = vmatprep.subr.mxu0 %v4786_v45 }
0x26a5   :  { %5380 = vmatpush3.msra.mxu0 %v4770_v46 }
0x26a6   :  { %5381 = vmatprep.subr.mxu0 %v4785_v47 }
0x26a7   :  { %5382 = vmatpush3.msra.mxu0 %v4769_v48 }
0x26a8   :  { %5383 = vmatprep.subr.mxu0 %v4784_v49 }
0x26a9   :  { %5384 = vmatpush3.msra.mxu0 %v4768_v50 }
0x26aa   :  { %5385 = vmatprep.subr.mxu0 %v4783_v51 }
0x26ab   :  { %5386 = vmatpush3.msra.mxu0 %v4767_v28 }
0x26ac   :  { %5387 = vmatprep.subr.mxu0 %v4782_v52 }
0x26ad   :  { %5388 = vmatpush3.msra.mxu0 %v4766_v13 }
0x26ae   :  { %5389 = vmatprep.subr.mxu0 %v4781_v15 }
0x26af   :  { %5390 = vmatpush3.msra.mxu0 %v4765_v53 }
0x26b0   :  { %5391 = vmatprep.subr.mxu0 %v4780_v54 }
0x26b1   :  { %5392 = vmatpush3.msra.mxu0 %v4764_v55 }
0x26b2   :  { %5393 = vmatprep.subr.mxu0 %v4779_v56 }
0x26b3   :  { %5394 = vmatpush3.msra.mxu0 %v4763_v57 }
0x274c   :  { %v4660_v61 = vpop.f32.mrf.mxu0 }
0x274e   :  { %v4662_v2 = vpop.f32.mrf.mxu0 }
0x2750   :  { %v4734_v3 = vpop.f32.mrf.mxu0 }
0x2751   :  { %v4735_v6 = vadd.f32 %v4734_v3, %v4660_v61 }
0x2752   :  { %v4736_v8 = vpop.f32.mrf.mxu0 }
0x2753   :  { %v4737_v14 = vadd.f32 %v4736_v8, %v4662_v2  ;;  %v4750_v9 = vadd.f32 %v4743_v4, %v4735_v6 }
0x2754   :  { %v4863_v10 = vpop.f32.mrf.mxu0 }
0x2755   :  { %v4751_v11 = vadd.f32 %v4747_v7, %v4737_v14  ;;  %v4752_v17 = vmax.f32 %v4750_v9, 0.0 }
0x2756   :  { %v5911_v12 = vpop.f32.mrf.mxu0 }
0x2757   :  { %v4753_v16 = vmax.f32 %v4751_v11, 0.0 }
0x2759   :  { %4931 = vmatprep.mubr.f32.mxu0 %v4753_v16 }
0x275a   :  { %4932 = vmatmul.mubr.f32.vlgmr.msra.gmra.mxu0 %v4752_v17 }
0x281a   :  { %v5395_v18 = vpop.f32.mrf.mxu0 }
0x281c   :  { %v5396_v5 = vpop.f32.mrf.mxu0 }
0x281d   :  { %v5397_v19 = vadd.f32 %v5396_v5, %v5395_v18 }
0x281f   :  { %v4934_v21 = vadd.f32 %v5397_v19, %v4863_v10 }
0x2821   :  { %v5016_v23 = vadd.f32 %v5015_v20, %v4934_v21 }
0x2823   :  { %v5022_v24 = vadd.f32 %v5135_v22, %v5016_v23 }
0x2825   :  { %5023 = vst [vmem:[%s7163_s4] sm:$0xff] %v5022_v24 }

</bundles_post_ra>
